<compile_context>
chip_gen: v7x
topology: tpu7x:2x2x1
jax: 0.10.0
libtpu: 0.0.40
codegen_flags: <defaults>
</compile_context>

<pallas_src>
import functools
import math

import jax
import jax.numpy as jnp
from jax.experimental import pallas as pl
from jax.experimental.pallas import tpu as pltpu

# MXU operands in bf16, accumulation in f32 (per perf review).  All
# element-wise math (gates, LayerNorm, softmax), the cell/hidden state and
# accumulators stay in f32 — v5e has no bf16 VPU/EUP path.
MXU_DTYPE = jnp.bfloat16
LN_EPS = 1e-5  # PyTorch nn.LayerNorm default


def _matmul_nt(x, w):
    """x:(M,K) @ w:(N,K)^T on the MXU; bf16 operands, f32 accumulation."""
    return jax.lax.dot_general(
        x.astype(MXU_DTYPE), w.astype(MXU_DTYPE),
        dimension_numbers=(((1,), (1,)), ((), ())),
        preferred_element_type=jnp.float32)


# --------------------------- generic tiled linear ---------------------------

def _linear_kernel(x_ref, w_ref, b_ref, o_ref, *, activation):
    y = _matmul_nt(x_ref[...], w_ref[...]) + b_ref[...]
    if activation == "relu":
        y = jnp.maximum(y, 0.0)
    o_ref[...] = y.astype(o_ref.dtype)


def linear(x, w, b, activation=None, block_m=256):
    """y = x @ w.T + b, with w kept in its PyTorch (N, K) layout (no transpose
    op in the wrapper).  Tiled over M so activations stream through VMEM while
    the weight block stays resident; M axis marked 'parallel'."""
    M, K = x.shape
    N = w.shape[0]
    bm = M if M <= block_m else block_m
    return pl.pallas_call(
        functools.partial(_linear_kernel, activation=activation),
        out_shape=jax.ShapeDtypeStruct((M, N), x.dtype),
        grid=(pl.cdiv(M, bm),),
        in_specs=[pl.BlockSpec((bm, K), lambda i: (i, 0)),
                  pl.BlockSpec((N, K), lambda i: (0, 0)),
                  pl.BlockSpec((1, N), lambda i: (0, 0))],
        out_specs=pl.BlockSpec((bm, N), lambda i: (i, 0)),
        compiler_params=pltpu.CompilerParams(
            dimension_semantics=("parallel",)),
    )(x, w, b.reshape(1, N))


# ------------------------ LSTM layer (+ residual + LN) ----------------------

def _lstm_chunk_kernel(xg_ref, res_ref, whh_ref, g_ref, b_ref, out_ref,
                       h_scr, c_scr, *, hidden_dim):
    """One chunk of timesteps.
    xg_ref : (CS, B, 4H) input-side gate pre-activations (bias already folded).
    res_ref: (CS, B, H)  layer input (the residual).
    out_ref: (CS, B, H)  LayerNorm(lstm_out + residual).
    h_scr/c_scr carry the recurrent state across chunks (sequential grid)."""
    H = hidden_dim
    CS = xg_ref.shape[0]

    @pl.when(pl.program_id(0) == 0)
    def _():
        h_scr[...] = jnp.zeros_like(h_scr)
        c_scr[...] = jnp.zeros_like(c_scr)

    w_hh = whh_ref[...].astype(MXU_DTYPE)  # cast once per chunk, stays in vregs

    def step(t, carry):
        gates = xg_ref[t] + jax.lax.dot_general(
            h_scr[...].astype(MXU_DTYPE), w_hh,
            dimension_numbers=(((1,), (1,)), ((), ())),
            preferred_element_type=jnp.float32)
        # Two full-width (4H-lane) activation passes instead of four sub-128
        # lane-masked ones; the slices below only feed cheap VPU combines.
        sg = jax.nn.sigmoid(gates)
        tg = jnp.tanh(gates)
        # PyTorch gate order: i, f, g, o
        c = sg[:, H:2 * H] * c_scr[...] + sg[:, 0:H] * tg[:, 2 * H:3 * H]
        h = sg[:, 3 * H:4 * H] * jnp.tanh(c)
        c_scr[...] = c
        h_scr[...] = h
        out_ref[t] = h.astype(out_ref.dtype)
        return carry

    jax.lax.fori_loop(0, CS, step, 0, unroll=True)

    # Fused residual-add + LayerNorm epilogue, one wide pass over the chunk.
    v = out_ref[...].astype(jnp.float32) + res_ref[...].astype(jnp.float32)
    mean = jnp.mean(v, axis=-1, keepdims=True)
    var = jnp.mean(jnp.square(v - mean), axis=-1, keepdims=True)
    norm = (v - mean) * jax.lax.rsqrt(var + LN_EPS)
    out_ref[...] = (norm * g_ref[...] + b_ref[...]).astype(out_ref.dtype)


def _pick_seq_chunk(S, B, H, budget_bytes=8 << 20, max_unroll=32):
    """Largest divisor of S (<= max_unroll) whose double-buffered chunk
    footprint fits a conservative VMEM budget (safe for v7x's 64 MiB)."""
    best = 1
    for cs in range(1, min(S, max_unroll) + 1):
        if S % cs:
            continue
        blk = 2 * cs * B * (4 * H + 2 * H) * 4 + 2 * 4 * H * H * 4
        if blk <= budget_bytes:
            best = cs
    return best


def lstm_layer(h_tm, w_ih, w_hh, bias, ln_g, ln_b):
    """Single batch_first nn.LSTM layer (zero init state) + residual +
    LayerNorm, on a time-major (S, B, H) input."""
    S, B, H = h_tm.shape
    # Input-side gates for the whole sequence in ONE tiled matmul.  Because the
    # activations are already time-major, the reshape to (S, B, 4H) is free —
    # no per-layer transpose.
    xg = linear(h_tm.reshape(S * B, H), w_ih, bias).reshape(S, B, 4 * H)

    cs = _pick_seq_chunk(S, B, H)
    return pl.pallas_call(
        functools.partial(_lstm_chunk_kernel, hidden_dim=H),
        out_shape=jax.ShapeDtypeStruct((S, B, H), h_tm.dtype),
        grid=(S // cs,),
        in_specs=[pl.BlockSpec((cs, B, 4 * H), lambda c: (c, 0, 0)),
                  pl.BlockSpec((cs, B, H), lambda c: (c, 0, 0)),
                  pl.BlockSpec((4 * H, H), lambda c: (0, 0)),
                  pl.BlockSpec((1, 1, H), lambda c: (0, 0, 0)),
                  pl.BlockSpec((1, 1, H), lambda c: (0, 0, 0))],
        out_specs=pl.BlockSpec((cs, B, H), lambda c: (c, 0, 0)),
        scratch_shapes=[pltpu.VMEM((B, H), jnp.float32),
                        pltpu.VMEM((B, H), jnp.float32)],
        compiler_params=pltpu.CompilerParams(
            dimension_semantics=("arbitrary",)),
    )(xg, h_tm, w_hh, ln_g.reshape(1, 1, H), ln_b.reshape(1, 1, H))


# ------------------------- attention + output head --------------------------

def _attn_core_kernel(q_ref, k_ref, v_ref, o_ref, *, scale):
    # Per-head softmax(q k^T * scale) v over the *batch* axis (reproducing
    # PyTorch's batch_first=False usage), for a single sequence position.
    s = jnp.einsum("hqd,hkd->hqk", q_ref[...].astype(MXU_DTYPE),
                   k_ref[...].astype(MXU_DTYPE),
                   preferred_element_type=jnp.float32) * scale
    s = s - jnp.max(s, axis=-1, keepdims=True)
    p = jnp.exp(s)
    p = p * pl.reciprocal(jnp.sum(p, axis=-1, keepdims=True), approx=True)
    o = jnp.einsum("hqk,hkd->hqd", p.astype(MXU_DTYPE),
                   v_ref[...].astype(MXU_DTYPE),
                   preferred_element_type=jnp.float32)
    o_ref[...] = o.astype(o_ref.dtype)


def _head_kernel(attn_ref, res_ref, ow_ref, ob_ref, w1_ref, b1_ref,
                 w2_ref, b2_ref, o_ref):
    """Fused: attention out-projection + residual add + fc1(+ReLU) + fc2.
    Every intermediate stays in VMEM/vregs — no standalone `add` kernel and no
    narrow fc1 output ever written to HBM."""
    h = _matmul_nt(attn_ref[...], ow_ref[...]) + ob_ref[...]
    h = h + res_ref[...].astype(jnp.float32)            # x + attn_out
    y = jnp.maximum(_matmul_nt(h, w1_ref[...]) + b1_ref[...], 0.0)
    z = _matmul_nt(y, w2_ref[...]) + b2_ref[...]
    o_ref[...] = z.astype(o_ref.dtype)


def attention_and_head(last, p, num_heads):
    """PyTorch applies nn.MultiheadAttention(batch_first=False) to the
    (batch, seq, hidden) tensor, so attention runs independently per sequence
    position (over the batch axis), and the model only consumes position S-1
    afterwards.  Evaluating the attention block only at `last` = x[:, -1, :]
    is therefore mathematically identical to the reference forward."""
    B, E = last.shape
    hd = E // num_heads
    # Fused QKV projection: ONE matmul with the full (3E, E) in_proj weight.
    qkv = linear(last, p["attn_in_w"], p["attn_in_b"])            # (B, 3E)

    def heads(t):  # (B, E) -> (num_heads, B, hd), matching PyTorch's head split
        return jnp.transpose(t.reshape(B, num_heads, hd), (1, 0, 2))

    qh, kh, vh = heads(qkv[:, :E]), heads(qkv[:, E:2 * E]), heads(qkv[:, 2 * E:])
    attn = pl.pallas_call(
        functools.partial(_attn_core_kernel, scale=1.0 / math.sqrt(hd)),
        out_shape=jax.ShapeDtypeStruct((num_heads, B, hd), last.dtype),
    )(qh, kh, vh)
    attn_m = jnp.transpose(attn, (1, 0, 2)).reshape(B, E)          # concat heads

    out_dim = p["fc2_w"].shape[0]
    return pl.pallas_call(
        _head_kernel,
        out_shape=jax.ShapeDtypeStruct((B, out_dim), last.dtype),
    )(attn_m, last,
      p["attn_out_w"], p["attn_out_b"].reshape(1, E),
      p["fc1_w"], p["fc1_b"].reshape(1, -1),
      p["fc2_w"], p["fc2_b"].reshape(1, -1))


# ----------------------------- model (glue) -----------------------------

def init_params(key, input_dim, hidden_dim, num_layers, output_dim):
    keys = iter(jax.random.split(key, 64))

    def unif(shape, bound):
        return jax.random.uniform(next(keys), shape, jnp.float32, -bound, bound)

    H = hidden_dim
    p = {
        "in_proj_w": unif((H, input_dim), 1.0 / math.sqrt(input_dim)),
        "in_proj_b": unif((H,), 1.0 / math.sqrt(input_dim)),
        "lstm": [],
        "ln_g": jnp.ones((H,), jnp.float32),
        "ln_b": jnp.zeros((H,), jnp.float32),
        "attn_in_w": unif((3 * H, H), 1.0 / math.sqrt(H)),
        "attn_in_b": jnp.zeros((3 * H,), jnp.float32),
        "attn_out_w": unif((H, H), 1.0 / math.sqrt(H)),
        "attn_out_b": jnp.zeros((H,), jnp.float32),
        "fc1_w": unif((H // 2, H), 1.0 / math.sqrt(H)),
        "fc1_b": unif((H // 2,), 1.0 / math.sqrt(H)),
        "fc2_w": unif((output_dim, H // 2), 1.0 / math.sqrt(H // 2)),
        "fc2_b": unif((output_dim,), 1.0 / math.sqrt(H // 2)),
    }
    b = 1.0 / math.sqrt(H)
    for _ in range(num_layers):
        p["lstm"].append({
            "w_ih": unif((4 * H, H), b),
            "w_hh": unif((4 * H, H), b),
            "b_ih": unif((4 * H,), b),
            "b_hh": unif((4 * H,), b),
        })
    return p


def enhanced_lstm_forward(params, x, num_heads=4):
    B, S, D = x.shape
    H = params["in_proj_w"].shape[0]

    # One small transpose of the raw input to time-major (S, B, D); the whole
    # recurrent stack then runs time-major so no per-layer gate transposes.
    x_tm = jnp.transpose(x, (1, 0, 2))
    h = linear(x_tm.reshape(S * B, D), params["in_proj_w"],
               params["in_proj_b"]).reshape(S, B, H)

    # LSTM stack: each layer kernel fuses the recurrence with the residual add
    # and the (shared) LayerNorm.  Dropout = identity (inference).
    for lw in params["lstm"]:
        h = lstm_layer(h, lw["w_ih"], lw["w_hh"], lw["b_ih"] + lw["b_hh"],
                       params["ln_g"], params["ln_b"])

    last = h[S - 1]                      # == x[:, -1, :] in PyTorch layout, (B, H)
    return attention_and_head(last, params, num_heads)


if __name__ == "__main__":
    key = jax.random.PRNGKey(0)
    k_param, k_x = jax.random.split(key)

    input_dim, hidden_dim, num_layers, output_dim = 16, 32, 2, 4
    batch, seq = 2, 8

    params = init_params(k_param, input_dim, hidden_dim, num_layers, output_dim)
    x = jax.random.normal(k_x, (batch, seq, input_dim), jnp.float32)

    out = jax.jit(enhanced_lstm_forward)(params, x)
    jax.block_until_ready(out)
    assert out.shape == (batch, output_dim), out.shape
    print("KERNEL_OK")
</pallas_src>

<mosaic_0001>
module attributes {stable_mosaic.version = 11 : i64} {
  func.func @_linear_kernel(%arg0: i32, %arg1: memref<16x16xf32, #tpu.memory_space<vmem>>, %arg2: memref<32x16xf32, #tpu.memory_space<vmem>>, %arg3: memref<1x32xf32, #tpu.memory_space<vmem>>, %arg4: memref<16x32xf32, #tpu.memory_space<vmem>>) attributes {dimension_semantics = [#tpu.dimension_semantics<parallel>], iteration_bounds = array<i64: 1>, scalar_prefetch = 0 : i64, scratch_operands = 0 : i64, tpu.core_type = #tpu.core_type<tc>, window_params = [{transform_indices = @transform_0, window_bounds = array<i64: 16, 16>}, {pipeline_mode = #tpu.pipeline_mode<synchronous>, transform_indices = @transform_1, window_bounds = array<i64: 32, 16>}, {pipeline_mode = #tpu.pipeline_mode<synchronous>, transform_indices = @transform_2, window_bounds = array<i64: 1, 32>}, {transform_indices = @transform_3, window_bounds = array<i64: 16, 32>}]} {
    %c0 = arith.constant 0 : index
    %c0_0 = arith.constant 0 : index
    %0 = vector.load %arg1[%c0, %c0_0] : memref<16x16xf32, #tpu.memory_space<vmem>>, vector<16x16xf32>
    %c0_1 = arith.constant 0 : index
    %c0_2 = arith.constant 0 : index
    %1 = vector.load %arg2[%c0_1, %c0_2] : memref<32x16xf32, #tpu.memory_space<vmem>>, vector<32x16xf32>
    %2 = arith.truncf %0 : vector<16x16xf32> to vector<16x16xbf16>
    %3 = arith.truncf %1 : vector<32x16xf32> to vector<32x16xbf16>
    %cst = arith.constant dense<0.000000e+00> : vector<16x32xf32>
    %4 = tpu.matmul %2, %3, %cst {dimension_numbers = #tpu.dot_dimension_numbers<[1], [1], [0], [0], [0, 0, 1, 0], [], []>} : vector<16x16xbf16>, vector<32x16xbf16>, vector<16x32xf32> -> vector<16x32xf32>
    %c0_3 = arith.constant 0 : index
    %c0_4 = arith.constant 0 : index
    %5 = vector.load %arg3[%c0_3, %c0_4] : memref<1x32xf32, #tpu.memory_space<vmem>>, vector<1x32xf32>
    %6 = vector.broadcast %5 : vector<1x32xf32> to vector<16x32xf32>
    %7 = arith.addf %4, %6 : vector<16x32xf32>
    %c0_5 = arith.constant 0 : index
    %c0_6 = arith.constant 0 : index
    %8 = vector.load %arg4[%c0_5, %c0_6] : memref<16x32xf32, #tpu.memory_space<vmem>>, vector<16x32xf32>
    tpu.vector_store %arg4[%c0_5, %c0_6], %7 {strides = array<i32>} : memref<16x32xf32, #tpu.memory_space<vmem>>, vector<16x32xf32>,
    return
  }
  func.func @transform_0(%arg0: i32) -> (i32, i32) {
    %c0_i32 = arith.constant 0 : i32
    %c0_i32_0 = arith.constant 0 : i32
    return %arg0, %c0_i32 : i32, i32
  }
  func.func @transform_1(%arg0: i32) -> (i32, i32) {
    %c0_i32 = arith.constant 0 : i32
    %c0_i32_0 = arith.constant 0 : i32
    %c0_i32_1 = arith.constant 0 : i32
    return %c0_i32, %c0_i32_0 : i32, i32
  }
  func.func @transform_2(%arg0: i32) -> (i32, i32) {
    %c0_i32 = arith.constant 0 : i32
    %c0_i32_0 = arith.constant 0 : i32
    %c0_i32_1 = arith.constant 0 : i32
    return %c0_i32, %c0_i32_0 : i32, i32
  }
  func.func @transform_3(%arg0: i32) -> (i32, i32) {
    %c0_i32 = arith.constant 0 : i32
    %c0_i32_0 = arith.constant 0 : i32
    return %arg0, %c0_i32 : i32, i32
  }
}

module attributes {stable_mosaic.version = 11 : i64} {
  func.func @_linear_kernel(%arg0: i32, %arg1: memref<16x32xf32, #tpu.memory_space<vmem>>, %arg2: memref<128x32xf32, #tpu.memory_space<vmem>>, %arg3: memref<1x128xf32, #tpu.memory_space<vmem>>, %arg4: memref<16x128xf32, #tpu.memory_space<vmem>>) attributes {dimension_semantics = [#tpu.dimension_semantics<parallel>], iteration_bounds = array<i64: 1>, scalar_prefetch = 0 : i64, scratch_operands = 0 : i64, tpu.core_type = #tpu.core_type<tc>, window_params = [{transform_indices = @transform_0, window_bounds = array<i64: 16, 32>}, {pipeline_mode = #tpu.pipeline_mode<synchronous>, transform_indices = @transform_1, window_bounds = array<i64: 128, 32>}, {pipeline_mode = #tpu.pipeline_mode<synchronous>, transform_indices = @transform_2, window_bounds = array<i64: 1, 128>}, {transform_indices = @transform_3, window_bounds = array<i64: 16, 128>}]} {
    %c0 = arith.constant 0 : index
    %c0_0 = arith.constant 0 : index
    %0 = vector.load %arg1[%c0, %c0_0] : memref<16x32xf32, #tpu.memory_space<vmem>>, vector<16x32xf32>
    %c0_1 = arith.constant 0 : index
    %c0_2 = arith.constant 0 : index
    %1 = vector.load %arg2[%c0_1, %c0_2] : memref<128x32xf32, #tpu.memory_space<vmem>>, vector<128x32xf32>
    %2 = arith.truncf %0 : vector<16x32xf32> to vector<16x32xbf16>
    %3 = arith.truncf %1 : vector<128x32xf32> to vector<128x32xbf16>
    %cst = arith.constant dense<0.000000e+00> : vector<16x128xf32>
    %4 = tpu.matmul %2, %3, %cst {dimension_numbers = #tpu.dot_dimension_numbers<[1], [1], [0], [0], [0, 0, 1, 0], [], []>} : vector<16x32xbf16>, vector<128x32xbf16>, vector<16x128xf32> -> vector<16x128xf32>
    %c0_3 = arith.constant 0 : index
    %c0_4 = arith.constant 0 : index
    %5 = vector.load %arg3[%c0_3, %c0_4] : memref<1x128xf32, #tpu.memory_space<vmem>>, vector<1x128xf32>
    %6 = vector.broadcast %5 : vector<1x128xf32> to vector<16x128xf32>
    %7 = arith.addf %4, %6 : vector<16x128xf32>
    %c0_5 = arith.constant 0 : index
    %c0_6 = arith.constant 0 : index
    %8 = vector.load %arg4[%c0_5, %c0_6] : memref<16x128xf32, #tpu.memory_space<vmem>>, vector<16x128xf32>
    tpu.vector_store %arg4[%c0_5, %c0_6], %7 {strides = array<i32>} : memref<16x128xf32, #tpu.memory_space<vmem>>, vector<16x128xf32>,
    return
  }
  func.func @transform_0(%arg0: i32) -> (i32, i32) {
    %c0_i32 = arith.constant 0 : i32
    %c0_i32_0 = arith.constant 0 : i32
    return %arg0, %c0_i32 : i32, i32
  }
  func.func @transform_1(%arg0: i32) -> (i32, i32) {
    %c0_i32 = arith.constant 0 : i32
    %c0_i32_0 = arith.constant 0 : i32
    %c0_i32_1 = arith.constant 0 : i32
    return %c0_i32, %c0_i32_0 : i32, i32
  }
  func.func @transform_2(%arg0: i32) -> (i32, i32) {
    %c0_i32 = arith.constant 0 : i32
    %c0_i32_0 = arith.constant 0 : i32
    %c0_i32_1 = arith.constant 0 : i32
    return %c0_i32, %c0_i32_0 : i32, i32
  }
  func.func @transform_3(%arg0: i32) -> (i32, i32) {
    %c0_i32 = arith.constant 0 : i32
    %c0_i32_0 = arith.constant 0 : i32
    return %arg0, %c0_i32 : i32, i32
  }
}

module attributes {stable_mosaic.version = 11 : i64} {
  func.func @_lstm_chunk_kernel(%arg0: i32, %arg1: memref<8x2x128xf32, #tpu.memory_space<vmem>>, %arg2: memref<8x2x32xf32, #tpu.memory_space<vmem>>, %arg3: memref<128x32xf32, #tpu.memory_space<vmem>>, %arg4: memref<1x1x32xf32, #tpu.memory_space<vmem>>, %arg5: memref<1x1x32xf32, #tpu.memory_space<vmem>>, %arg6: memref<8x2x32xf32, #tpu.memory_space<vmem>>, %arg7: memref<2x32xf32, #tpu.memory_space<vmem>>, %arg8: memref<2x32xf32, #tpu.memory_space<vmem>>) attributes {dimension_semantics = [#tpu.dimension_semantics<arbitrary>], iteration_bounds = array<i64: 1>, scalar_prefetch = 0 : i64, scratch_operands = 2 : i64, tpu.core_type = #tpu.core_type<tc>, window_params = [{transform_indices = @transform_0, window_bounds = array<i64: 8, 2, 128>}, {transform_indices = @transform_1, window_bounds = array<i64: 8, 2, 32>}, {pipeline_mode = #tpu.pipeline_mode<synchronous>, transform_indices = @transform_2, window_bounds = array<i64: 128, 32>}, {pipeline_mode = #tpu.pipeline_mode<synchronous>, transform_indices = @transform_3, window_bounds = array<i64: 1, 1, 32>}, {pipeline_mode = #tpu.pipeline_mode<synchronous>, transform_indices = @transform_4, window_bounds = array<i64: 1, 1, 32>}, {transform_indices = @transform_5, window_bounds = array<i64: 8, 2, 32>}]} {
    %c0_i32 = arith.constant 0 : i32
    %0 = arith.cmpi eq, %arg0, %c0_i32 : i32
    %1 = arith.extui %0 : i1 to i32
    %c0_i32_0 = arith.constant 0 : i32
    %2 = arith.cmpi ne, %1, %c0_i32_0 : i32
    scf.if %2 {
      %cst_134 = arith.constant 0.000000e+00 : f32
      %265 = vector.broadcast %cst_134 : f32 to vector<2x32xf32>
      %c0_135 = arith.constant 0 : index
      %c0_136 = arith.constant 0 : index
      %266 = vector.load %arg7[%c0_135, %c0_136] : memref<2x32xf32, #tpu.memory_space<vmem>>, vector<2x32xf32>
      tpu.vector_store %arg7[%c0_135, %c0_136], %265 {strides = array<i32>} : memref<2x32xf32, #tpu.memory_space<vmem>>, vector<2x32xf32>,
      %cst_137 = arith.constant 0.000000e+00 : f32
      %267 = vector.broadcast %cst_137 : f32 to vector<2x32xf32>
      %c0_138 = arith.constant 0 : index
      %c0_139 = arith.constant 0 : index
      %268 = vector.load %arg8[%c0_138, %c0_139] : memref<2x32xf32, #tpu.memory_space<vmem>>, vector<2x32xf32>
      tpu.vector_store %arg8[%c0_138, %c0_139], %267 {strides = array<i32>} : memref<2x32xf32, #tpu.memory_space<vmem>>, vector<2x32xf32>,
    } else {
    }
    %c0 = arith.constant 0 : index
    %c0_1 = arith.constant 0 : index
    %3 = vector.load %arg3[%c0, %c0_1] : memref<128x32xf32, #tpu.memory_space<vmem>>, vector<128x32xf32>
    %4 = arith.truncf %3 : vector<128x32xf32> to vector<128x32xbf16>
    %c0_i32_2 = arith.constant 0 : i32
    %5 = arith.index_cast %c0_i32_2 : i32 to index
    %c0_3 = arith.constant 0 : index
    %c0_4 = arith.constant 0 : index
    %6 = vector.load %arg1[%5, %c0_3, %c0_4] : memref<8x2x128xf32, #tpu.memory_space<vmem>>, vector<1x2x128xf32>
    %7 = vector.shape_cast %6 : vector<1x2x128xf32> to vector<2x128xf32>
    %c0_5 = arith.constant 0 : index
    %c0_6 = arith.constant 0 : index
    %8 = vector.load %arg7[%c0_5, %c0_6] : memref<2x32xf32, #tpu.memory_space<vmem>>, vector<2x32xf32>
    %9 = arith.truncf %8 : vector<2x32xf32> to vector<2x32xbf16>
    %cst = arith.constant dense<0.000000e+00> : vector<2x128xf32>
    %10 = tpu.matmul %9, %4, %cst {dimension_numbers = #tpu.dot_dimension_numbers<[1], [1], [0], [0], [0, 0, 1, 0], [], []>} : vector<2x32xbf16>, vector<128x32xbf16>, vector<2x128xf32> -> vector<2x128xf32>
    %11 = arith.addf %7, %10 : vector<2x128xf32>
    %12 = arith.negf %11 : vector<2x128xf32>
    %13 = math.exp %12 : vector<2x128xf32>
    %cst_7 = arith.constant 1.000000e+00 : f32
    %14 = vector.broadcast %cst_7 : f32 to vector<2x128xf32>
    %15 = arith.addf %14, %13 : vector<2x128xf32>
    %16 = arith.divf %14, %15 : vector<2x128xf32>
    %17 = math.tanh %11 : vector<2x128xf32>
    %18 = vector.extract_strided_slice %16 {offsets = [0, 32], sizes = [2, 32], strides = [1, 1]} : vector<2x128xf32> to vector<2x32xf32>
    %c0_8 = arith.constant 0 : index
    %c0_9 = arith.constant 0 : index
    %19 = vector.load %arg8[%c0_8, %c0_9] : memref<2x32xf32, #tpu.memory_space<vmem>>, vector<2x32xf32>
    %20 = arith.mulf %18, %19 : vector<2x32xf32>
    %21 = vector.extract_strided_slice %16 {offsets = [0, 0], sizes = [2, 32], strides = [1, 1]} : vector<2x128xf32> to vector<2x32xf32>
    %22 = vector.extract_strided_slice %17 {offsets = [0, 64], sizes = [2, 32], strides = [1, 1]} : vector<2x128xf32> to vector<2x32xf32>
    %23 = arith.mulf %21, %22 : vector<2x32xf32>
    %24 = arith.addf %20, %23 : vector<2x32xf32>
    %25 = vector.extract_strided_slice %16 {offsets = [0, 96], sizes = [2, 32], strides = [1, 1]} : vector<2x128xf32> to vector<2x32xf32>
    %26 = math.tanh %24 : vector<2x32xf32>
    %27 = arith.mulf %25, %26 : vector<2x32xf32>
    %c0_10 = arith.constant 0 : index
    %c0_11 = arith.constant 0 : index
    %28 = vector.load %arg8[%c0_10, %c0_11] : memref<2x32xf32, #tpu.memory_space<vmem>>, vector<2x32xf32>
    tpu.vector_store %arg8[%c0_10, %c0_11], %24 {strides = array<i32>} : memref<2x32xf32, #tpu.memory_space<vmem>>, vector<2x32xf32>,
    %c0_12 = arith.constant 0 : index
    %c0_13 = arith.constant 0 : index
    %29 = vector.load %arg7[%c0_12, %c0_13] : memref<2x32xf32, #tpu.memory_space<vmem>>, vector<2x32xf32>
    tpu.vector_store %arg7[%c0_12, %c0_13], %27 {strides = array<i32>} : memref<2x32xf32, #tpu.memory_space<vmem>>, vector<2x32xf32>,
    %30 = arith.index_cast %c0_i32_2 : i32 to index
    %c0_14 = arith.constant 0 : index
    %c0_15 = arith.constant 0 : index
    %31 = vector.load %arg6[%30, %c0_14, %c0_15] : memref<8x2x32xf32, #tpu.memory_space<vmem>>, vector<1x2x32xf32>
    %32 = vector.shape_cast %31 : vector<1x2x32xf32> to vector<2x32xf32>
    %33 = vector.shape_cast %27 : vector<2x32xf32> to vector<1x2x32xf32>
    tpu.vector_store %arg6[%30, %c0_14, %c0_15], %33 {strides = array<i32>} : memref<8x2x32xf32, #tpu.memory_space<vmem>>, vector<1x2x32xf32>,
    %c1_i32 = arith.constant 1 : i32
    %34 = arith.index_cast %c1_i32 : i32 to index
    %c0_16 = arith.constant 0 : index
    %c0_17 = arith.constant 0 : index
    %35 = vector.load %arg1[%34, %c0_16, %c0_17] : memref<8x2x128xf32, #tpu.memory_space<vmem>>, vector<1x2x128xf32>
    %36 = vector.shape_cast %35 : vector<1x2x128xf32> to vector<2x128xf32>
    %c0_18 = arith.constant 0 : index
    %c0_19 = arith.constant 0 : index
    %37 = vector.load %arg7[%c0_18, %c0_19] : memref<2x32xf32, #tpu.memory_space<vmem>>, vector<2x32xf32>
    %38 = arith.truncf %37 : vector<2x32xf32> to vector<2x32xbf16>
    %cst_20 = arith.constant dense<0.000000e+00> : vector<2x128xf32>
    %39 = tpu.matmul %38, %4, %cst_20 {dimension_numbers = #tpu.dot_dimension_numbers<[1], [1], [0], [0], [0, 0, 1, 0], [], []>} : vector<2x32xbf16>, vector<128x32xbf16>, vector<2x128xf32> -> vector<2x128xf32>
    %40 = arith.addf %36, %39 : vector<2x128xf32>
    %41 = arith.negf %40 : vector<2x128xf32>
    %42 = math.exp %41 : vector<2x128xf32>
    %cst_21 = arith.constant 1.000000e+00 : f32
    %43 = vector.broadcast %cst_21 : f32 to vector<2x128xf32>
    %44 = arith.addf %43, %42 : vector<2x128xf32>
    %45 = arith.divf %43, %44 : vector<2x128xf32>
    %46 = math.tanh %40 : vector<2x128xf32>
    %47 = vector.extract_strided_slice %45 {offsets = [0, 32], sizes = [2, 32], strides = [1, 1]} : vector<2x128xf32> to vector<2x32xf32>
    %c0_22 = arith.constant 0 : index
    %c0_23 = arith.constant 0 : index
    %48 = vector.load %arg8[%c0_22, %c0_23] : memref<2x32xf32, #tpu.memory_space<vmem>>, vector<2x32xf32>
    %49 = arith.mulf %47, %48 : vector<2x32xf32>
    %50 = vector.extract_strided_slice %45 {offsets = [0, 0], sizes = [2, 32], strides = [1, 1]} : vector<2x128xf32> to vector<2x32xf32>
    %51 = vector.extract_strided_slice %46 {offsets = [0, 64], sizes = [2, 32], strides = [1, 1]} : vector<2x128xf32> to vector<2x32xf32>
    %52 = arith.mulf %50, %51 : vector<2x32xf32>
    %53 = arith.addf %49, %52 : vector<2x32xf32>
    %54 = vector.extract_strided_slice %45 {offsets = [0, 96], sizes = [2, 32], strides = [1, 1]} : vector<2x128xf32> to vector<2x32xf32>
    %55 = math.tanh %53 : vector<2x32xf32>
    %56 = arith.mulf %54, %55 : vector<2x32xf32>
    %c0_24 = arith.constant 0 : index
    %c0_25 = arith.constant 0 : index
    %57 = vector.load %arg8[%c0_24, %c0_25] : memref<2x32xf32, #tpu.memory_space<vmem>>, vector<2x32xf32>
    tpu.vector_store %arg8[%c0_24, %c0_25], %53 {strides = array<i32>} : memref<2x32xf32, #tpu.memory_space<vmem>>, vector<2x32xf32>,
    %c0_26 = arith.constant 0 : index
    %c0_27 = arith.constant 0 : index
    %58 = vector.load %arg7[%c0_26, %c0_27] : memref<2x32xf32, #tpu.memory_space<vmem>>, vector<2x32xf32>
    tpu.vector_store %arg7[%c0_26, %c0_27], %56 {strides = array<i32>} : memref<2x32xf32, #tpu.memory_space<vmem>>, vector<2x32xf32>,
    %59 = arith.index_cast %c1_i32 : i32 to index
    %c0_28 = arith.constant 0 : index
    %c0_29 = arith.constant 0 : index
    %60 = vector.load %arg6[%59, %c0_28, %c0_29] : memref<8x2x32xf32, #tpu.memory_space<vmem>>, vector<1x2x32xf32>
    %61 = vector.shape_cast %60 : vector<1x2x32xf32> to vector<2x32xf32>
    %62 = vector.shape_cast %56 : vector<2x32xf32> to vector<1x2x32xf32>
    tpu.vector_store %arg6[%59, %c0_28, %c0_29], %62 {strides = array<i32>} : memref<8x2x32xf32, #tpu.memory_space<vmem>>, vector<1x2x32xf32>,
    %c2_i32 = arith.constant 2 : i32
    %63 = arith.index_cast %c2_i32 : i32 to index
    %c0_30 = arith.constant 0 : index
    %c0_31 = arith.constant 0 : index
    %64 = vector.load %arg1[%63, %c0_30, %c0_31] : memref<8x2x128xf32, #tpu.memory_space<vmem>>, vector<1x2x128xf32>
    %65 = vector.shape_cast %64 : vector<1x2x128xf32> to vector<2x128xf32>
    %c0_32 = arith.constant 0 : index
    %c0_33 = arith.constant 0 : index
    %66 = vector.load %arg7[%c0_32, %c0_33] : memref<2x32xf32, #tpu.memory_space<vmem>>, vector<2x32xf32>
    %67 = arith.truncf %66 : vector<2x32xf32> to vector<2x32xbf16>
    %cst_34 = arith.constant dense<0.000000e+00> : vector<2x128xf32>
    %68 = tpu.matmul %67, %4, %cst_34 {dimension_numbers = #tpu.dot_dimension_numbers<[1], [1], [0], [0], [0, 0, 1, 0], [], []>} : vector<2x32xbf16>, vector<128x32xbf16>, vector<2x128xf32> -> vector<2x128xf32>
    %69 = arith.addf %65, %68 : vector<2x128xf32>
    %70 = arith.negf %69 : vector<2x128xf32>
    %71 = math.exp %70 : vector<2x128xf32>
    %cst_35 = arith.constant 1.000000e+00 : f32
    %72 = vector.broadcast %cst_35 : f32 to vector<2x128xf32>
    %73 = arith.addf %72, %71 : vector<2x128xf32>
    %74 = arith.divf %72, %73 : vector<2x128xf32>
    %75 = math.tanh %69 : vector<2x128xf32>
    %76 = vector.extract_strided_slice %74 {offsets = [0, 32], sizes = [2, 32], strides = [1, 1]} : vector<2x128xf32> to vector<2x32xf32>
    %c0_36 = arith.constant 0 : index
    %c0_37 = arith.constant 0 : index
    %77 = vector.load %arg8[%c0_36, %c0_37] : memref<2x32xf32, #tpu.memory_space<vmem>>, vector<2x32xf32>
    %78 = arith.mulf %76, %77 : vector<2x32xf32>
    %79 = vector.extract_strided_slice %74 {offsets = [0, 0], sizes = [2, 32], strides = [1, 1]} : vector<2x128xf32> to vector<2x32xf32>
    %80 = vector.extract_strided_slice %75 {offsets = [0, 64], sizes = [2, 32], strides = [1, 1]} : vector<2x128xf32> to vector<2x32xf32>
    %81 = arith.mulf %79, %80 : vector<2x32xf32>
    %82 = arith.addf %78, %81 : vector<2x32xf32>
    %83 = vector.extract_strided_slice %74 {offsets = [0, 96], sizes = [2, 32], strides = [1, 1]} : vector<2x128xf32> to vector<2x32xf32>
    %84 = math.tanh %82 : vector<2x32xf32>
    %85 = arith.mulf %83, %84 : vector<2x32xf32>
    %c0_38 = arith.constant 0 : index
    %c0_39 = arith.constant 0 : index
    %86 = vector.load %arg8[%c0_38, %c0_39] : memref<2x32xf32, #tpu.memory_space<vmem>>, vector<2x32xf32>
    tpu.vector_store %arg8[%c0_38, %c0_39], %82 {strides = array<i32>} : memref<2x32xf32, #tpu.memory_space<vmem>>, vector<2x32xf32>,
    %c0_40 = arith.constant 0 : index
    %c0_41 = arith.constant 0 : index
    %87 = vector.load %arg7[%c0_40, %c0_41] : memref<2x32xf32, #tpu.memory_space<vmem>>, vector<2x32xf32>
    tpu.vector_store %arg7[%c0_40, %c0_41], %85 {strides = array<i32>} : memref<2x32xf32, #tpu.memory_space<vmem>>, vector<2x32xf32>,
    %88 = arith.index_cast %c2_i32 : i32 to index
    %c0_42 = arith.constant 0 : index
    %c0_43 = arith.constant 0 : index
    %89 = vector.load %arg6[%88, %c0_42, %c0_43] : memref<8x2x32xf32, #tpu.memory_space<vmem>>, vector<1x2x32xf32>
    %90 = vector.shape_cast %89 : vector<1x2x32xf32> to vector<2x32xf32>
    %91 = vector.shape_cast %85 : vector<2x32xf32> to vector<1x2x32xf32>
    tpu.vector_store %arg6[%88, %c0_42, %c0_43], %91 {strides = array<i32>} : memref<8x2x32xf32, #tpu.memory_space<vmem>>, vector<1x2x32xf32>,
    %c3_i32 = arith.constant 3 : i32
    %92 = arith.index_cast %c3_i32 : i32 to index
    %c0_44 = arith.constant 0 : index
    %c0_45 = arith.constant 0 : index
    %93 = vector.load %arg1[%92, %c0_44, %c0_45] : memref<8x2x128xf32, #tpu.memory_space<vmem>>, vector<1x2x128xf32>
    %94 = vector.shape_cast %93 : vector<1x2x128xf32> to vector<2x128xf32>
    %c0_46 = arith.constant 0 : index
    %c0_47 = arith.constant 0 : index
    %95 = vector.load %arg7[%c0_46, %c0_47] : memref<2x32xf32, #tpu.memory_space<vmem>>, vector<2x32xf32>
    %96 = arith.truncf %95 : vector<2x32xf32> to vector<2x32xbf16>
    %cst_48 = arith.constant dense<0.000000e+00> : vector<2x128xf32>
    %97 = tpu.matmul %96, %4, %cst_48 {dimension_numbers = #tpu.dot_dimension_numbers<[1], [1], [0], [0], [0, 0, 1, 0], [], []>} : vector<2x32xbf16>, vector<128x32xbf16>, vector<2x128xf32> -> vector<2x128xf32>
    %98 = arith.addf %94, %97 : vector<2x128xf32>
    %99 = arith.negf %98 : vector<2x128xf32>
    %100 = math.exp %99 : vector<2x128xf32>
    %cst_49 = arith.constant 1.000000e+00 : f32
    %101 = vector.broadcast %cst_49 : f32 to vector<2x128xf32>
    %102 = arith.addf %101, %100 : vector<2x128xf32>
    %103 = arith.divf %101, %102 : vector<2x128xf32>
    %104 = math.tanh %98 : vector<2x128xf32>
    %105 = vector.extract_strided_slice %103 {offsets = [0, 32], sizes = [2, 32], strides = [1, 1]} : vector<2x128xf32> to vector<2x32xf32>
    %c0_50 = arith.constant 0 : index
    %c0_51 = arith.constant 0 : index
    %106 = vector.load %arg8[%c0_50, %c0_51] : memref<2x32xf32, #tpu.memory_space<vmem>>, vector<2x32xf32>
    %107 = arith.mulf %105, %106 : vector<2x32xf32>
    %108 = vector.extract_strided_slice %103 {offsets = [0, 0], sizes = [2, 32], strides = [1, 1]} : vector<2x128xf32> to vector<2x32xf32>
    %109 = vector.extract_strided_slice %104 {offsets = [0, 64], sizes = [2, 32], strides = [1, 1]} : vector<2x128xf32> to vector<2x32xf32>
    %110 = arith.mulf %108, %109 : vector<2x32xf32>
    %111 = arith.addf %107, %110 : vector<2x32xf32>
    %112 = vector.extract_strided_slice %103 {offsets = [0, 96], sizes = [2, 32], strides = [1, 1]} : vector<2x128xf32> to vector<2x32xf32>
    %113 = math.tanh %111 : vector<2x32xf32>
    %114 = arith.mulf %112, %113 : vector<2x32xf32>
    %c0_52 = arith.constant 0 : index
    %c0_53 = arith.constant 0 : index
    %115 = vector.load %arg8[%c0_52, %c0_53] : memref<2x32xf32, #tpu.memory_space<vmem>>, vector<2x32xf32>
    tpu.vector_store %arg8[%c0_52, %c0_53], %111 {strides = array<i32>} : memref<2x32xf32, #tpu.memory_space<vmem>>, vector<2x32xf32>,
    %c0_54 = arith.constant 0 : index
    %c0_55 = arith.constant 0 : index
    %116 = vector.load %arg7[%c0_54, %c0_55] : memref<2x32xf32, #tpu.memory_space<vmem>>, vector<2x32xf32>
    tpu.vector_store %arg7[%c0_54, %c0_55], %114 {strides = array<i32>} : memref<2x32xf32, #tpu.memory_space<vmem>>, vector<2x32xf32>,
    %117 = arith.index_cast %c3_i32 : i32 to index
    %c0_56 = arith.constant 0 : index
    %c0_57 = arith.constant 0 : index
    %118 = vector.load %arg6[%117, %c0_56, %c0_57] : memref<8x2x32xf32, #tpu.memory_space<vmem>>, vector<1x2x32xf32>
    %119 = vector.shape_cast %118 : vector<1x2x32xf32> to vector<2x32xf32>
    %120 = vector.shape_cast %114 : vector<2x32xf32> to vector<1x2x32xf32>
    tpu.vector_store %arg6[%117, %c0_56, %c0_57], %120 {strides = array<i32>} : memref<8x2x32xf32, #tpu.memory_space<vmem>>, vector<1x2x32xf32>,
    %c4_i32 = arith.constant 4 : i32
    %121 = arith.index_cast %c4_i32 : i32 to index
    %c0_58 = arith.constant 0 : index
    %c0_59 = arith.constant 0 : index
    %122 = vector.load %arg1[%121, %c0_58, %c0_59] : memref<8x2x128xf32, #tpu.memory_space<vmem>>, vector<1x2x128xf32>
    %123 = vector.shape_cast %122 : vector<1x2x128xf32> to vector<2x128xf32>
    %c0_60 = arith.constant 0 : index
    %c0_61 = arith.constant 0 : index
    %124 = vector.load %arg7[%c0_60, %c0_61] : memref<2x32xf32, #tpu.memory_space<vmem>>, vector<2x32xf32>
    %125 = arith.truncf %124 : vector<2x32xf32> to vector<2x32xbf16>
    %cst_62 = arith.constant dense<0.000000e+00> : vector<2x128xf32>
    %126 = tpu.matmul %125, %4, %cst_62 {dimension_numbers = #tpu.dot_dimension_numbers<[1], [1], [0], [0], [0, 0, 1, 0], [], []>} : vector<2x32xbf16>, vector<128x32xbf16>, vector<2x128xf32> -> vector<2x128xf32>
    %127 = arith.addf %123, %126 : vector<2x128xf32>
    %128 = arith.negf %127 : vector<2x128xf32>
    %129 = math.exp %128 : vector<2x128xf32>
    %cst_63 = arith.constant 1.000000e+00 : f32
    %130 = vector.broadcast %cst_63 : f32 to vector<2x128xf32>
    %131 = arith.addf %130, %129 : vector<2x128xf32>
    %132 = arith.divf %130, %131 : vector<2x128xf32>
    %133 = math.tanh %127 : vector<2x128xf32>
    %134 = vector.extract_strided_slice %132 {offsets = [0, 32], sizes = [2, 32], strides = [1, 1]} : vector<2x128xf32> to vector<2x32xf32>
    %c0_64 = arith.constant 0 : index
    %c0_65 = arith.constant 0 : index
    %135 = vector.load %arg8[%c0_64, %c0_65] : memref<2x32xf32, #tpu.memory_space<vmem>>, vector<2x32xf32>
    %136 = arith.mulf %134, %135 : vector<2x32xf32>
    %137 = vector.extract_strided_slice %132 {offsets = [0, 0], sizes = [2, 32], strides = [1, 1]} : vector<2x128xf32> to vector<2x32xf32>
    %138 = vector.extract_strided_slice %133 {offsets = [0, 64], sizes = [2, 32], strides = [1, 1]} : vector<2x128xf32> to vector<2x32xf32>
    %139 = arith.mulf %137, %138 : vector<2x32xf32>
    %140 = arith.addf %136, %139 : vector<2x32xf32>
    %141 = vector.extract_strided_slice %132 {offsets = [0, 96], sizes = [2, 32], strides = [1, 1]} : vector<2x128xf32> to vector<2x32xf32>
    %142 = math.tanh %140 : vector<2x32xf32>
    %143 = arith.mulf %141, %142 : vector<2x32xf32>
    %c0_66 = arith.constant 0 : index
    %c0_67 = arith.constant 0 : index
    %144 = vector.load %arg8[%c0_66, %c0_67] : memref<2x32xf32, #tpu.memory_space<vmem>>, vector<2x32xf32>
    tpu.vector_store %arg8[%c0_66, %c0_67], %140 {strides = array<i32>} : memref<2x32xf32, #tpu.memory_space<vmem>>, vector<2x32xf32>,
    %c0_68 = arith.constant 0 : index
    %c0_69 = arith.constant 0 : index
    %145 = vector.load %arg7[%c0_68, %c0_69] : memref<2x32xf32, #tpu.memory_space<vmem>>, vector<2x32xf32>
    tpu.vector_store %arg7[%c0_68, %c0_69], %143 {strides = array<i32>} : memref<2x32xf32, #tpu.memory_space<vmem>>, vector<2x32xf32>,
    %146 = arith.index_cast %c4_i32 : i32 to index
    %c0_70 = arith.constant 0 : index
    %c0_71 = arith.constant 0 : index
    %147 = vector.load %arg6[%146, %c0_70, %c0_71] : memref<8x2x32xf32, #tpu.memory_space<vmem>>, vector<1x2x32xf32>
    %148 = vector.shape_cast %147 : vector<1x2x32xf32> to vector<2x32xf32>
    %149 = vector.shape_cast %143 : vector<2x32xf32> to vector<1x2x32xf32>
    tpu.vector_store %arg6[%146, %c0_70, %c0_71], %149 {strides = array<i32>} : memref<8x2x32xf32, #tpu.memory_space<vmem>>, vector<1x2x32xf32>,
    %c5_i32 = arith.constant 5 : i32
    %150 = arith.index_cast %c5_i32 : i32 to index
    %c0_72 = arith.constant 0 : index
    %c0_73 = arith.constant 0 : index
    %151 = vector.load %arg1[%150, %c0_72, %c0_73] : memref<8x2x128xf32, #tpu.memory_space<vmem>>, vector<1x2x128xf32>
    %152 = vector.shape_cast %151 : vector<1x2x128xf32> to vector<2x128xf32>
    %c0_74 = arith.constant 0 : index
    %c0_75 = arith.constant 0 : index
    %153 = vector.load %arg7[%c0_74, %c0_75] : memref<2x32xf32, #tpu.memory_space<vmem>>, vector<2x32xf32>
    %154 = arith.truncf %153 : vector<2x32xf32> to vector<2x32xbf16>
    %cst_76 = arith.constant dense<0.000000e+00> : vector<2x128xf32>
    %155 = tpu.matmul %154, %4, %cst_76 {dimension_numbers = #tpu.dot_dimension_numbers<[1], [1], [0], [0], [0, 0, 1, 0], [], []>} : vector<2x32xbf16>, vector<128x32xbf16>, vector<2x128xf32> -> vector<2x128xf32>
    %156 = arith.addf %152, %155 : vector<2x128xf32>
    %157 = arith.negf %156 : vector<2x128xf32>
    %158 = math.exp %157 : vector<2x128xf32>
    %cst_77 = arith.constant 1.000000e+00 : f32
    %159 = vector.broadcast %cst_77 : f32 to vector<2x128xf32>
    %160 = arith.addf %159, %158 : vector<2x128xf32>
    %161 = arith.divf %159, %160 : vector<2x128xf32>
    %162 = math.tanh %156 : vector<2x128xf32>
    %163 = vector.extract_strided_slice %161 {offsets = [0, 32], sizes = [2, 32], strides = [1, 1]} : vector<2x128xf32> to vector<2x32xf32>
    %c0_78 = arith.constant 0 : index
    %c0_79 = arith.constant 0 : index
    %164 = vector.load %arg8[%c0_78, %c0_79] : memref<2x32xf32, #tpu.memory_space<vmem>>, vector<2x32xf32>
    %165 = arith.mulf %163, %164 : vector<2x32xf32>
    %166 = vector.extract_strided_slice %161 {offsets = [0, 0], sizes = [2, 32], strides = [1, 1]} : vector<2x128xf32> to vector<2x32xf32>
    %167 = vector.extract_strided_slice %162 {offsets = [0, 64], sizes = [2, 32], strides = [1, 1]} : vector<2x128xf32> to vector<2x32xf32>
    %168 = arith.mulf %166, %167 : vector<2x32xf32>
    %169 = arith.addf %165, %168 : vector<2x32xf32>
    %170 = vector.extract_strided_slice %161 {offsets = [0, 96], sizes = [2, 32], strides = [1, 1]} : vector<2x128xf32> to vector<2x32xf32>
    %171 = math.tanh %169 : vector<2x32xf32>
    %172 = arith.mulf %170, %171 : vector<2x32xf32>
    %c0_80 = arith.constant 0 : index
    %c0_81 = arith.constant 0 : index
    %173 = vector.load %arg8[%c0_80, %c0_81] : memref<2x32xf32, #tpu.memory_space<vmem>>, vector<2x32xf32>
    tpu.vector_store %arg8[%c0_80, %c0_81], %169 {strides = array<i32>} : memref<2x32xf32, #tpu.memory_space<vmem>>, vector<2x32xf32>,
    %c0_82 = arith.constant 0 : index
    %c0_83 = arith.constant 0 : index
    %174 = vector.load %arg7[%c0_82, %c0_83] : memref<2x32xf32, #tpu.memory_space<vmem>>, vector<2x32xf32>
    tpu.vector_store %arg7[%c0_82, %c0_83], %172 {strides = array<i32>} : memref<2x32xf32, #tpu.memory_space<vmem>>, vector<2x32xf32>,
    %175 = arith.index_cast %c5_i32 : i32 to index
    %c0_84 = arith.constant 0 : index
    %c0_85 = arith.constant 0 : index
    %176 = vector.load %arg6[%175, %c0_84, %c0_85] : memref<8x2x32xf32, #tpu.memory_space<vmem>>, vector<1x2x32xf32>
    %177 = vector.shape_cast %176 : vector<1x2x32xf32> to vector<2x32xf32>
    %178 = vector.shape_cast %172 : vector<2x32xf32> to vector<1x2x32xf32>
    tpu.vector_store %arg6[%175, %c0_84, %c0_85], %178 {strides = array<i32>} : memref<8x2x32xf32, #tpu.memory_space<vmem>>, vector<1x2x32xf32>,
    %c6_i32 = arith.constant 6 : i32
    %179 = arith.index_cast %c6_i32 : i32 to index
    %c0_86 = arith.constant 0 : index
    %c0_87 = arith.constant 0 : index
    %180 = vector.load %arg1[%179, %c0_86, %c0_87] : memref<8x2x128xf32, #tpu.memory_space<vmem>>, vector<1x2x128xf32>
    %181 = vector.shape_cast %180 : vector<1x2x128xf32> to vector<2x128xf32>
    %c0_88 = arith.constant 0 : index
    %c0_89 = arith.constant 0 : index
    %182 = vector.load %arg7[%c0_88, %c0_89] : memref<2x32xf32, #tpu.memory_space<vmem>>, vector<2x32xf32>
    %183 = arith.truncf %182 : vector<2x32xf32> to vector<2x32xbf16>
    %cst_90 = arith.constant dense<0.000000e+00> : vector<2x128xf32>
    %184 = tpu.matmul %183, %4, %cst_90 {dimension_numbers = #tpu.dot_dimension_numbers<[1], [1], [0], [0], [0, 0, 1, 0], [], []>} : vector<2x32xbf16>, vector<128x32xbf16>, vector<2x128xf32> -> vector<2x128xf32>
    %185 = arith.addf %181, %184 : vector<2x128xf32>
    %186 = arith.negf %185 : vector<2x128xf32>
    %187 = math.exp %186 : vector<2x128xf32>
    %cst_91 = arith.constant 1.000000e+00 : f32
    %188 = vector.broadcast %cst_91 : f32 to vector<2x128xf32>
    %189 = arith.addf %188, %187 : vector<2x128xf32>
    %190 = arith.divf %188, %189 : vector<2x128xf32>
    %191 = math.tanh %185 : vector<2x128xf32>
    %192 = vector.extract_strided_slice %190 {offsets = [0, 32], sizes = [2, 32], strides = [1, 1]} : vector<2x128xf32> to vector<2x32xf32>
    %c0_92 = arith.constant 0 : index
    %c0_93 = arith.constant 0 : index
    %193 = vector.load %arg8[%c0_92, %c0_93] : memref<2x32xf32, #tpu.memory_space<vmem>>, vector<2x32xf32>
    %194 = arith.mulf %192, %193 : vector<2x32xf32>
    %195 = vector.extract_strided_slice %190 {offsets = [0, 0], sizes = [2, 32], strides = [1, 1]} : vector<2x128xf32> to vector<2x32xf32>
    %196 = vector.extract_strided_slice %191 {offsets = [0, 64], sizes = [2, 32], strides = [1, 1]} : vector<2x128xf32> to vector<2x32xf32>
    %197 = arith.mulf %195, %196 : vector<2x32xf32>
    %198 = arith.addf %194, %197 : vector<2x32xf32>
    %199 = vector.extract_strided_slice %190 {offsets = [0, 96], sizes = [2, 32], strides = [1, 1]} : vector<2x128xf32> to vector<2x32xf32>
    %200 = math.tanh %198 : vector<2x32xf32>
    %201 = arith.mulf %199, %200 : vector<2x32xf32>
    %c0_94 = arith.constant 0 : index
    %c0_95 = arith.constant 0 : index
    %202 = vector.load %arg8[%c0_94, %c0_95] : memref<2x32xf32, #tpu.memory_space<vmem>>, vector<2x32xf32>
    tpu.vector_store %arg8[%c0_94, %c0_95], %198 {strides = array<i32>} : memref<2x32xf32, #tpu.memory_space<vmem>>, vector<2x32xf32>,
    %c0_96 = arith.constant 0 : index
    %c0_97 = arith.constant 0 : index
    %203 = vector.load %arg7[%c0_96, %c0_97] : memref<2x32xf32, #tpu.memory_space<vmem>>, vector<2x32xf32>
    tpu.vector_store %arg7[%c0_96, %c0_97], %201 {strides = array<i32>} : memref<2x32xf32, #tpu.memory_space<vmem>>, vector<2x32xf32>,
    %204 = arith.index_cast %c6_i32 : i32 to index
    %c0_98 = arith.constant 0 : index
    %c0_99 = arith.constant 0 : index
    %205 = vector.load %arg6[%204, %c0_98, %c0_99] : memref<8x2x32xf32, #tpu.memory_space<vmem>>, vector<1x2x32xf32>
    %206 = vector.shape_cast %205 : vector<1x2x32xf32> to vector<2x32xf32>
    %207 = vector.shape_cast %201 : vector<2x32xf32> to vector<1x2x32xf32>
    tpu.vector_store %arg6[%204, %c0_98, %c0_99], %207 {strides = array<i32>} : memref<8x2x32xf32, #tpu.memory_space<vmem>>, vector<1x2x32xf32>,
    %c7_i32 = arith.constant 7 : i32
    %208 = arith.index_cast %c7_i32 : i32 to index
    %c0_100 = arith.constant 0 : index
    %c0_101 = arith.constant 0 : index
    %209 = vector.load %arg1[%208, %c0_100, %c0_101] : memref<8x2x128xf32, #tpu.memory_space<vmem>>, vector<1x2x128xf32>
    %210 = vector.shape_cast %209 : vector<1x2x128xf32> to vector<2x128xf32>
    %c0_102 = arith.constant 0 : index
    %c0_103 = arith.constant 0 : index
    %211 = vector.load %arg7[%c0_102, %c0_103] : memref<2x32xf32, #tpu.memory_space<vmem>>, vector<2x32xf32>
    %212 = arith.truncf %211 : vector<2x32xf32> to vector<2x32xbf16>
    %cst_104 = arith.constant dense<0.000000e+00> : vector<2x128xf32>
    %213 = tpu.matmul %212, %4, %cst_104 {dimension_numbers = #tpu.dot_dimension_numbers<[1], [1], [0], [0], [0, 0, 1, 0], [], []>} : vector<2x32xbf16>, vector<128x32xbf16>, vector<2x128xf32> -> vector<2x128xf32>
    %214 = arith.addf %210, %213 : vector<2x128xf32>
    %215 = arith.negf %214 : vector<2x128xf32>
    %216 = math.exp %215 : vector<2x128xf32>
    %cst_105 = arith.constant 1.000000e+00 : f32
    %217 = vector.broadcast %cst_105 : f32 to vector<2x128xf32>
    %218 = arith.addf %217, %216 : vector<2x128xf32>
    %219 = arith.divf %217, %218 : vector<2x128xf32>
    %220 = math.tanh %214 : vector<2x128xf32>
    %221 = vector.extract_strided_slice %219 {offsets = [0, 32], sizes = [2, 32], strides = [1, 1]} : vector<2x128xf32> to vector<2x32xf32>
    %c0_106 = arith.constant 0 : index
    %c0_107 = arith.constant 0 : index
    %222 = vector.load %arg8[%c0_106, %c0_107] : memref<2x32xf32, #tpu.memory_space<vmem>>, vector<2x32xf32>
    %223 = arith.mulf %221, %222 : vector<2x32xf32>
    %224 = vector.extract_strided_slice %219 {offsets = [0, 0], sizes = [2, 32], strides = [1, 1]} : vector<2x128xf32> to vector<2x32xf32>
    %225 = vector.extract_strided_slice %220 {offsets = [0, 64], sizes = [2, 32], strides = [1, 1]} : vector<2x128xf32> to vector<2x32xf32>
    %226 = arith.mulf %224, %225 : vector<2x32xf32>
    %227 = arith.addf %223, %226 : vector<2x32xf32>
    %228 = vector.extract_strided_slice %219 {offsets = [0, 96], sizes = [2, 32], strides = [1, 1]} : vector<2x128xf32> to vector<2x32xf32>
    %229 = math.tanh %227 : vector<2x32xf32>
    %230 = arith.mulf %228, %229 : vector<2x32xf32>
    %c0_108 = arith.constant 0 : index
    %c0_109 = arith.constant 0 : index
    %231 = vector.load %arg8[%c0_108, %c0_109] : memref<2x32xf32, #tpu.memory_space<vmem>>, vector<2x32xf32>
    tpu.vector_store %arg8[%c0_108, %c0_109], %227 {strides = array<i32>} : memref<2x32xf32, #tpu.memory_space<vmem>>, vector<2x32xf32>,
    %c0_110 = arith.constant 0 : index
    %c0_111 = arith.constant 0 : index
    %232 = vector.load %arg7[%c0_110, %c0_111] : memref<2x32xf32, #tpu.memory_space<vmem>>, vector<2x32xf32>
    tpu.vector_store %arg7[%c0_110, %c0_111], %230 {strides = array<i32>} : memref<2x32xf32, #tpu.memory_space<vmem>>, vector<2x32xf32>,
    %233 = arith.index_cast %c7_i32 : i32 to index
    %c0_112 = arith.constant 0 : index
    %c0_113 = arith.constant 0 : index
    %234 = vector.load %arg6[%233, %c0_112, %c0_113] : memref<8x2x32xf32, #tpu.memory_space<vmem>>, vector<1x2x32xf32>
    %235 = vector.shape_cast %234 : vector<1x2x32xf32> to vector<2x32xf32>
    %236 = vector.shape_cast %230 : vector<2x32xf32> to vector<1x2x32xf32>
    tpu.vector_store %arg6[%233, %c0_112, %c0_113], %236 {strides = array<i32>} : memref<8x2x32xf32, #tpu.memory_space<vmem>>, vector<1x2x32xf32>,
    %c8_i32 = arith.constant 8 : i32
    %c0_114 = arith.constant 0 : index
    %c0_115 = arith.constant 0 : index
    %c0_116 = arith.constant 0 : index
    %237 = vector.load %arg6[%c0_114, %c0_115, %c0_116] : memref<8x2x32xf32, #tpu.memory_space<vmem>>, vector<8x2x32xf32>
    %c0_117 = arith.constant 0 : index
    %c0_118 = arith.constant 0 : index
    %c0_119 = arith.constant 0 : index
    %238 = vector.load %arg2[%c0_117, %c0_118, %c0_119] : memref<8x2x32xf32, #tpu.memory_space<vmem>>, vector<8x2x32xf32>
    %239 = arith.addf %237, %238 : vector<8x2x32xf32>
    %cst_120 = arith.constant dense<0.000000e+00> : vector<8x2xf32>
    %240 = vector.multi_reduction <add>, %239, %cst_120 [2] : vector<8x2x32xf32> to vector<8x2xf32>
    %241 = vector.shape_cast %240 : vector<8x2xf32> to vector<8x2x1xf32>
    %cst_121 = arith.constant 3.200000e+01 : f32
    %242 = vector.broadcast %cst_121 : f32 to vector<8x2x1xf32>
    %243 = arith.divf %241, %242 : vector<8x2x1xf32>
    %244 = vector.broadcast %243 : vector<8x2x1xf32> to vector<8x2x32xf32>
    %245 = arith.subf %239, %244 : vector<8x2x32xf32>
    %246 = arith.mulf %245, %245 : vector<8x2x32xf32>
    %cst_122 = arith.constant dense<0.000000e+00> : vector<8x2xf32>
    %247 = vector.multi_reduction <add>, %246, %cst_122 [2] : vector<8x2x32xf32> to vector<8x2xf32>
    %248 = vector.shape_cast %247 : vector<8x2xf32> to vector<8x2x1xf32>
    %cst_123 = arith.constant 3.200000e+01 : f32
    %249 = vector.broadcast %cst_123 : f32 to vector<8x2x1xf32>
    %250 = arith.divf %248, %249 : vector<8x2x1xf32>
    %251 = vector.broadcast %243 : vector<8x2x1xf32> to vector<8x2x32xf32>
    %252 = arith.subf %239, %251 : vector<8x2x32xf32>
    %cst_124 = arith.constant 9.99999974E-6 : f32
    %253 = vector.broadcast %cst_124 : f32 to vector<8x2x1xf32>
    %254 = arith.addf %250, %253 : vector<8x2x1xf32>
    %255 = math.rsqrt %254 : vector<8x2x1xf32>
    %256 = vector.broadcast %255 : vector<8x2x1xf32> to vector<8x2x32xf32>
    %257 = arith.mulf %252, %256 : vector<8x2x32xf32>
    %c0_125 = arith.constant 0 : index
    %c0_126 = arith.constant 0 : index
    %c0_127 = arith.constant 0 : index
    %258 = vector.load %arg4[%c0_125, %c0_126, %c0_127] : memref<1x1x32xf32, #tpu.memory_space<vmem>>, vector<1x1x32xf32>
    %259 = vector.broadcast %258 : vector<1x1x32xf32> to vector<8x2x32xf32>
    %260 = arith.mulf %257, %259 : vector<8x2x32xf32>
    %c0_128 = arith.constant 0 : index
    %c0_129 = arith.constant 0 : index
    %c0_130 = arith.constant 0 : index
    %261 = vector.load %arg5[%c0_128, %c0_129, %c0_130] : memref<1x1x32xf32, #tpu.memory_space<vmem>>, vector<1x1x32xf32>
    %262 = vector.broadcast %261 : vector<1x1x32xf32> to vector<8x2x32xf32>
    %263 = arith.addf %260, %262 : vector<8x2x32xf32>
    %c0_131 = arith.constant 0 : index
    %c0_132 = arith.constant 0 : index
    %c0_133 = arith.constant 0 : index
    %264 = vector.load %arg6[%c0_131, %c0_132, %c0_133] : memref<8x2x32xf32, #tpu.memory_space<vmem>>, vector<8x2x32xf32>
    tpu.vector_store %arg6[%c0_131, %c0_132, %c0_133], %263 {strides = array<i32>} : memref<8x2x32xf32, #tpu.memory_space<vmem>>, vector<8x2x32xf32>,
    return
  }
  func.func @transform_0(%arg0: i32) -> (i32, i32, i32) {
    %c0_i32 = arith.constant 0 : i32
    %c0_i32_0 = arith.constant 0 : i32
    %c0_i32_1 = arith.constant 0 : i32
    return %arg0, %c0_i32, %c0_i32_0 : i32, i32, i32
  }
  func.func @transform_1(%arg0: i32) -> (i32, i32, i32) {
    %c0_i32 = arith.constant 0 : i32
    %c0_i32_0 = arith.constant 0 : i32
    %c0_i32_1 = arith.constant 0 : i32
    return %arg0, %c0_i32, %c0_i32_0 : i32, i32, i32
  }
  func.func @transform_2(%arg0: i32) -> (i32, i32) {
    %c0_i32 = arith.constant 0 : i32
    %c0_i32_0 = arith.constant 0 : i32
    %c0_i32_1 = arith.constant 0 : i32
    return %c0_i32, %c0_i32_0 : i32, i32
  }
  func.func @transform_3(%arg0: i32) -> (i32, i32, i32) {
    %c0_i32 = arith.constant 0 : i32
    %c0_i32_0 = arith.constant 0 : i32
    %c0_i32_1 = arith.constant 0 : i32
    %c0_i32_2 = arith.constant 0 : i32
    return %c0_i32, %c0_i32_0, %c0_i32_1 : i32, i32, i32
  }
  func.func @transform_4(%arg0: i32) -> (i32, i32, i32) {
    %c0_i32 = arith.constant 0 : i32
    %c0_i32_0 = arith.constant 0 : i32
    %c0_i32_1 = arith.constant 0 : i32
    %c0_i32_2 = arith.constant 0 : i32
    return %c0_i32, %c0_i32_0, %c0_i32_1 : i32, i32, i32
  }
  func.func @transform_5(%arg0: i32) -> (i32, i32, i32) {
    %c0_i32 = arith.constant 0 : i32
    %c0_i32_0 = arith.constant 0 : i32
    %c0_i32_1 = arith.constant 0 : i32
    return %arg0, %c0_i32, %c0_i32_0 : i32, i32, i32
  }
}

module attributes {stable_mosaic.version = 11 : i64} {
  func.func @_linear_kernel(%arg0: i32, %arg1: memref<2x32xf32, #tpu.memory_space<vmem>>, %arg2: memref<96x32xf32, #tpu.memory_space<vmem>>, %arg3: memref<1x96xf32, #tpu.memory_space<vmem>>, %arg4: memref<2x96xf32, #tpu.memory_space<vmem>>) attributes {dimension_semantics = [#tpu.dimension_semantics<parallel>], iteration_bounds = array<i64: 1>, scalar_prefetch = 0 : i64, scratch_operands = 0 : i64, tpu.core_type = #tpu.core_type<tc>, window_params = [{transform_indices = @transform_0, window_bounds = array<i64: 2, 32>}, {pipeline_mode = #tpu.pipeline_mode<synchronous>, transform_indices = @transform_1, window_bounds = array<i64: 96, 32>}, {pipeline_mode = #tpu.pipeline_mode<synchronous>, transform_indices = @transform_2, window_bounds = array<i64: 1, 96>}, {transform_indices = @transform_3, window_bounds = array<i64: 2, 96>}]} {
    %c0 = arith.constant 0 : index
    %c0_0 = arith.constant 0 : index
    %0 = vector.load %arg1[%c0, %c0_0] : memref<2x32xf32, #tpu.memory_space<vmem>>, vector<2x32xf32>
    %c0_1 = arith.constant 0 : index
    %c0_2 = arith.constant 0 : index
    %1 = vector.load %arg2[%c0_1, %c0_2] : memref<96x32xf32, #tpu.memory_space<vmem>>, vector<96x32xf32>
    %2 = arith.truncf %0 : vector<2x32xf32> to vector<2x32xbf16>
    %3 = arith.truncf %1 : vector<96x32xf32> to vector<96x32xbf16>
    %cst = arith.constant dense<0.000000e+00> : vector<2x96xf32>
    %4 = tpu.matmul %2, %3, %cst {dimension_numbers = #tpu.dot_dimension_numbers<[1], [1], [0], [0], [0, 0, 1, 0], [], []>} : vector<2x32xbf16>, vector<96x32xbf16>, vector<2x96xf32> -> vector<2x96xf32>
    %c0_3 = arith.constant 0 : index
    %c0_4 = arith.constant 0 : index
    %5 = vector.load %arg3[%c0_3, %c0_4] : memref<1x96xf32, #tpu.memory_space<vmem>>, vector<1x96xf32>
    %6 = vector.broadcast %5 : vector<1x96xf32> to vector<2x96xf32>
    %7 = arith.addf %4, %6 : vector<2x96xf32>
    %c0_5 = arith.constant 0 : index
    %c0_6 = arith.constant 0 : index
    %8 = vector.load %arg4[%c0_5, %c0_6] : memref<2x96xf32, #tpu.memory_space<vmem>>, vector<2x96xf32>
    tpu.vector_store %arg4[%c0_5, %c0_6], %7 {strides = array<i32>} : memref<2x96xf32, #tpu.memory_space<vmem>>, vector<2x96xf32>,
    return
  }
  func.func @transform_0(%arg0: i32) -> (i32, i32) {
    %c0_i32 = arith.constant 0 : i32
    %c0_i32_0 = arith.constant 0 : i32
    return %arg0, %c0_i32 : i32, i32
  }
  func.func @transform_1(%arg0: i32) -> (i32, i32) {
    %c0_i32 = arith.constant 0 : i32
    %c0_i32_0 = arith.constant 0 : i32
    %c0_i32_1 = arith.constant 0 : i32
    return %c0_i32, %c0_i32_0 : i32, i32
  }
  func.func @transform_2(%arg0: i32) -> (i32, i32) {
    %c0_i32 = arith.constant 0 : i32
    %c0_i32_0 = arith.constant 0 : i32
    %c0_i32_1 = arith.constant 0 : i32
    return %c0_i32, %c0_i32_0 : i32, i32
  }
  func.func @transform_3(%arg0: i32) -> (i32, i32) {
    %c0_i32 = arith.constant 0 : i32
    %c0_i32_0 = arith.constant 0 : i32
    return %arg0, %c0_i32 : i32, i32
  }
}

module attributes {stable_mosaic.version = 11 : i64} {
  func.func @_attn_core_kernel(%arg0: memref<4x2x8xf32, #tpu.memory_space<vmem>>, %arg1: memref<4x2x8xf32, #tpu.memory_space<vmem>>, %arg2: memref<4x2x8xf32, #tpu.memory_space<vmem>>, %arg3: memref<4x2x8xf32, #tpu.memory_space<vmem>>) attributes {dimension_semantics = [], scalar_prefetch = 0 : i64, scratch_operands = 0 : i64, tpu.core_type = #tpu.core_type<tc>} {
    %c0 = arith.constant 0 : index
    %c0_0 = arith.constant 0 : index
    %c0_1 = arith.constant 0 : index
    %0 = vector.load %arg0[%c0, %c0_0, %c0_1] : memref<4x2x8xf32, #tpu.memory_space<vmem>>, vector<4x2x8xf32>
    %1 = arith.truncf %0 : vector<4x2x8xf32> to vector<4x2x8xbf16>
    %c0_2 = arith.constant 0 : index
    %c0_3 = arith.constant 0 : index
    %c0_4 = arith.constant 0 : index
    %2 = vector.load %arg1[%c0_2, %c0_3, %c0_4] : memref<4x2x8xf32, #tpu.memory_space<vmem>>, vector<4x2x8xf32>
    %3 = arith.truncf %2 : vector<4x2x8xf32> to vector<4x2x8xbf16>
    "tpu.trace_start"() <{level = 10 : i32, message = "hqd,hkd->hqk"}> : () -> ()
    %cst = arith.constant dense<0.000000e+00> : vector<4x2x2xf32>
    %4 = tpu.matmul %1, %3, %cst {dimension_numbers = #tpu.dot_dimension_numbers<[2], [2], [1], [1], [0, 0, 0, 1, 1, 1], [0], [0]>} : vector<4x2x8xbf16>, vector<4x2x8xbf16>, vector<4x2x2xf32> -> vector<4x2x2xf32>
    "tpu.trace_stop"() : () -> ()
    %cst_5 = arith.constant 0.353553385 : f32
    %5 = vector.broadcast %cst_5 : f32 to vector<4x2x2xf32>
    %6 = arith.mulf %4, %5 : vector<4x2x2xf32>
    %cst_6 = arith.constant dense<0xFF800000> : vector<4x2xf32>
    %7 = vector.multi_reduction <maximumf>, %6, %cst_6 [2] : vector<4x2x2xf32> to vector<4x2xf32>
    %8 = vector.shape_cast %7 : vector<4x2xf32> to vector<4x2x1xf32>
    %9 = vector.broadcast %8 : vector<4x2x1xf32> to vector<4x2x2xf32>
    %10 = arith.subf %6, %9 : vector<4x2x2xf32>
    %11 = math.exp %10 : vector<4x2x2xf32>
    %cst_7 = arith.constant dense<0.000000e+00> : vector<4x2xf32>
    %12 = vector.multi_reduction <add>, %11, %cst_7 [2] : vector<4x2x2xf32> to vector<4x2xf32>
    %13 = vector.shape_cast %12 : vector<4x2xf32> to vector<4x2x1xf32>
    %14 = tpu.reciprocal %13 {approx = true} : vector<4x2x1xf32> -> vector<4x2x1xf32>
    %15 = vector.broadcast %14 : vector<4x2x1xf32> to vector<4x2x2xf32>
    %16 = arith.mulf %11, %15 : vector<4x2x2xf32>
    %17 = arith.truncf %16 : vector<4x2x2xf32> to vector<4x2x2xbf16>
    %c0_8 = arith.constant 0 : index
    %c0_9 = arith.constant 0 : index
    %c0_10 = arith.constant 0 : index
    %18 = vector.load %arg2[%c0_8, %c0_9, %c0_10] : memref<4x2x8xf32, #tpu.memory_space<vmem>>, vector<4x2x8xf32>
    %19 = arith.truncf %18 : vector<4x2x8xf32> to vector<4x2x8xbf16>
    "tpu.trace_start"() <{level = 10 : i32, message = "hqk,hkd->hqd"}> : () -> ()
    %cst_11 = arith.constant dense<0.000000e+00> : vector<4x2x8xf32>
    %20 = tpu.matmul %17, %19, %cst_11 {dimension_numbers = #tpu.dot_dimension_numbers<[2], [1], [1], [2], [0, 0, 0, 1, 1, 2], [0], [0]>} : vector<4x2x2xbf16>, vector<4x2x8xbf16>, vector<4x2x8xf32> -> vector<4x2x8xf32>
    "tpu.trace_stop"() : () -> ()
    %c0_12 = arith.constant 0 : index
    %c0_13 = arith.constant 0 : index
    %c0_14 = arith.constant 0 : index
    %21 = vector.load %arg3[%c0_12, %c0_13, %c0_14] : memref<4x2x8xf32, #tpu.memory_space<vmem>>, vector<4x2x8xf32>
    tpu.vector_store %arg3[%c0_12, %c0_13, %c0_14], %20 {strides = array<i32>} : memref<4x2x8xf32, #tpu.memory_space<vmem>>, vector<4x2x8xf32>,
    return
  }
}

module attributes {stable_mosaic.version = 11 : i64} {
  func.func @_head_kernel(%arg0: memref<2x32xf32, #tpu.memory_space<vmem>>, %arg1: memref<2x32xf32, #tpu.memory_space<vmem>>, %arg2: memref<32x32xf32, #tpu.memory_space<vmem>>, %arg3: memref<1x32xf32, #tpu.memory_space<vmem>>, %arg4: memref<16x32xf32, #tpu.memory_space<vmem>>, %arg5: memref<1x16xf32, #tpu.memory_space<vmem>>, %arg6: memref<4x16xf32, #tpu.memory_space<vmem>>, %arg7: memref<1x4xf32, #tpu.memory_space<vmem>>, %arg8: memref<2x4xf32, #tpu.memory_space<vmem>>) attributes {dimension_semantics = [], scalar_prefetch = 0 : i64, scratch_operands = 0 : i64, tpu.core_type = #tpu.core_type<tc>} {
    %c0 = arith.constant 0 : index
    %c0_0 = arith.constant 0 : index
    %0 = vector.load %arg0[%c0, %c0_0] : memref<2x32xf32, #tpu.memory_space<vmem>>, vector<2x32xf32>
    %c0_1 = arith.constant 0 : index
    %c0_2 = arith.constant 0 : index
    %1 = vector.load %arg2[%c0_1, %c0_2] : memref<32x32xf32, #tpu.memory_space<vmem>>, vector<32x32xf32>
    %2 = arith.truncf %0 : vector<2x32xf32> to vector<2x32xbf16>
    %3 = arith.truncf %1 : vector<32x32xf32> to vector<32x32xbf16>
    %cst = arith.constant dense<0.000000e+00> : vector<2x32xf32>
    %4 = tpu.matmul %2, %3, %cst {dimension_numbers = #tpu.dot_dimension_numbers<[1], [1], [0], [0], [0, 0, 1, 0], [], []>} : vector<2x32xbf16>, vector<32x32xbf16>, vector<2x32xf32> -> vector<2x32xf32>
    %c0_3 = arith.constant 0 : index
    %c0_4 = arith.constant 0 : index
    %5 = vector.load %arg3[%c0_3, %c0_4] : memref<1x32xf32, #tpu.memory_space<vmem>>, vector<1x32xf32>
    %6 = vector.broadcast %5 : vector<1x32xf32> to vector<2x32xf32>
    %7 = arith.addf %4, %6 : vector<2x32xf32>
    %c0_5 = arith.constant 0 : index
    %c0_6 = arith.constant 0 : index
    %8 = vector.load %arg1[%c0_5, %c0_6] : memref<2x32xf32, #tpu.memory_space<vmem>>, vector<2x32xf32>
    %9 = arith.addf %7, %8 : vector<2x32xf32>
    %c0_7 = arith.constant 0 : index
    %c0_8 = arith.constant 0 : index
    %10 = vector.load %arg4[%c0_7, %c0_8] : memref<16x32xf32, #tpu.memory_space<vmem>>, vector<16x32xf32>
    %11 = arith.truncf %9 : vector<2x32xf32> to vector<2x32xbf16>
    %12 = arith.truncf %10 : vector<16x32xf32> to vector<16x32xbf16>
    %cst_9 = arith.constant dense<0.000000e+00> : vector<2x16xf32>
    %13 = tpu.matmul %11, %12, %cst_9 {dimension_numbers = #tpu.dot_dimension_numbers<[1], [1], [0], [0], [0, 0, 1, 0], [], []>} : vector<2x32xbf16>, vector<16x32xbf16>, vector<2x16xf32> -> vector<2x16xf32>
    %c0_10 = arith.constant 0 : index
    %c0_11 = arith.constant 0 : index
    %14 = vector.load %arg5[%c0_10, %c0_11] : memref<1x16xf32, #tpu.memory_space<vmem>>, vector<1x16xf32>
    %15 = vector.broadcast %14 : vector<1x16xf32> to vector<2x16xf32>
    %16 = arith.addf %13, %15 : vector<2x16xf32>
    %cst_12 = arith.constant 0.000000e+00 : f32
    %17 = vector.broadcast %cst_12 : f32 to vector<2x16xf32>
    %18 = arith.maximumf %16, %17 : vector<2x16xf32>
    %c0_13 = arith.constant 0 : index
    %c0_14 = arith.constant 0 : index
    %19 = vector.load %arg6[%c0_13, %c0_14] : memref<4x16xf32, #tpu.memory_space<vmem>>, vector<4x16xf32>
    %20 = arith.truncf %18 : vector<2x16xf32> to vector<2x16xbf16>
    %21 = arith.truncf %19 : vector<4x16xf32> to vector<4x16xbf16>
    %cst_15 = arith.constant dense<0.000000e+00> : vector<2x4xf32>
    %22 = tpu.matmul %20, %21, %cst_15 {dimension_numbers = #tpu.dot_dimension_numbers<[1], [1], [0], [0], [0, 0, 1, 0], [], []>} : vector<2x16xbf16>, vector<4x16xbf16>, vector<2x4xf32> -> vector<2x4xf32>
    %c0_16 = arith.constant 0 : index
    %c0_17 = arith.constant 0 : index
    %23 = vector.load %arg7[%c0_16, %c0_17] : memref<1x4xf32, #tpu.memory_space<vmem>>, vector<1x4xf32>
    %24 = vector.broadcast %23 : vector<1x4xf32> to vector<2x4xf32>
    %25 = arith.addf %22, %24 : vector<2x4xf32>
    %c0_18 = arith.constant 0 : index
    %c0_19 = arith.constant 0 : index
    %26 = vector.load %arg8[%c0_18, %c0_19] : memref<2x4xf32, #tpu.memory_space<vmem>>, vector<2x4xf32>
    tpu.vector_store %arg8[%c0_18, %c0_19], %25 {strides = array<i32>} : memref<2x4xf32, #tpu.memory_space<vmem>>, vector<2x4xf32>,
    return
  }
}

</mosaic_0001>

<bundles_post_ra>
// kernel: enhanced_lstm_forward.8
= control target key start
LH: loop header
LB: loop body
LE: loop exit
PB: predicated region body
PF: predicated region fallthrough
CT: control target
= control target key end

     0   :  { %v104_v0 = vmov 0.0   ;;  %vm31_vm0 = vcmask 130048   ;;  %vm105_vm1 = vmmov 0   ;;  %vm82_vm2 = vcmask 261120   ;;  %s156_s1 = inlined_call_operand.vmem [shape: f32[32,16], index: 1, kind: input, shape index: {}]   ;;  %s157_s0 = inlined_call_operand.vmem [shape: f32[16,16], index: 0, kind: input, shape index: {}]   ;;  %s158_s2 = inlined_call_operand.vmem [shape: f32[1,32], index: 2, kind: input, shape index: {}]   ;;  %s159_s3 = inlined_call_operand.vmem [shape: f32[16,32], index: 3, kind: output, shape index: {}]  }
   0x1   :  { %94 = vmatprep.subr.bf16.mxu0 %v104_v0  ;;  %v17_v1 = vld [vmem:[%s156_s1] sm:$0xff]  ;;  %v18_v2 = vld [vmem:[%s156_s1 + $0x8] sm:$0xff]  ;;  %98 = vmatprep.mubr.msk.bf16.mxu0 %vm105_vm1, %v104_v0  ;;  %v19_v4 = vld [vmem:[%s156_s1 + $0x10] sm:$0xff] }
   0x2   :  { %v22_v3 = vpack.c.bf16 %v18_v2, %v17_v1  ;;  %v20_v5 = vld [vmem:[%s156_s1 + $0x18] sm:$0xff]  ;;  %v15_v9 = vld [vmem:[%s157_s0] sm:$0xff]  ;;  %v16_v10 = vld [vmem:[%s157_s0 + $0x8] sm:$0xff] }
   0x3   :  { %v23_v7 = vpack.c.bf16 %v20_v5, %v19_v4  ;;  %v21_v11 = vpack.c.bf16 %v16_v10, %v15_v9  ;;  %v89_v12 = vld [vmem:[%s158_s2] ss:$0 sm:$0xff] }
   0x4   :  { %v36_v6 = vsel %vm31_vm0, %v22_v3, 0 }
   0x5   :  { %95 = vmatpush3.bf16.xpose.msra.mxu0 %v36_v6  ;;  %v39_v8 = vsel %vm31_vm0, %v23_v7, 0 }
   0x6   :  { %96 = vmatprep.subr.bf16.mxu0 %v104_v0 }
   0xd   :  { %97 = vmatpush3.bf16.xpose.msra.mxu0 %v39_v8 }
  0x14   :  { %99 = vmatmul.mubr.msk.bf16.vlgmr.msra.gmra.mrb[0].mxu0 %vm31_vm0, %v21_v11 }
  0xe7   :  { %v75_v13 = vpop.f32.mrb[0].mxu0 }
  0xe8   :  { %v76_v14 = vadd.f32 %v89_v12, %v75_v13  ;;  %v100_v15 = vpop.f32.mrb[1].mxu0 }
  0xe9   :  { %v78_v16 = vpop.f32.mrb[2].mxu0 }
  0xea   :  { %83 = vst.msk [vmem:[%s159_s3] sm:$0xff] %vm82_vm2, %v76_v14  ;;  %v79_v17 = vadd.f32 %v89_v12, %v78_v16  ;;  %v101_v18 = vpop.f32.mrb[3].mxu0 }
  0xec   :  { %84 = vst.msk [vmem:[%s159_s3 + $0x8] sm:$0xff] %vm82_vm2, %v79_v17 }

// kernel: enhanced_lstm_forward.9
= control target key start
LH: loop header
LB: loop body
LE: loop exit
PB: predicated region body
PF: predicated region fallthrough
CT: control target
= control target key end

     0   :  { %v157_v0 = vmov 0.0   ;;  %vm49_vm0 = vcmask 261120   ;;  %vm158_vm1 = vmmov 0   ;;  %s251_s1 = inlined_call_operand.vmem [shape: f32[128,32], index: 1, kind: input, shape index: {}]   ;;  %s252_s0 = inlined_call_operand.vmem [shape: f32[16,32], index: 0, kind: input, shape index: {}]   ;;  %s253_s2 = inlined_call_operand.vmem [shape: f32[1,128], index: 2, kind: input, shape index: {}]   ;;  %s254_s3 = inlined_call_operand.vmem [shape: f32[16,128], index: 3, kind: output, shape index: {}]  }
   0x1   :  { %135 = vmatprep.subr.bf16.mxu0 %v157_v0  ;;  %v17_v1 = vld [vmem:[%s251_s1] sm:$0xff]  ;;  %v18_v2 = vld [vmem:[%s251_s1 + $0x8] sm:$0xff]  ;;  %151 = vmatprep.mubr.msk.bf16.mxu0 %vm158_vm1, %v157_v0  ;;  %v19_v4 = vld [vmem:[%s251_s1 + $0x10] sm:$0xff] }
   0x2   :  { %v34_v3 = vpack.c.bf16 %v18_v2, %v17_v1  ;;  %v20_v5 = vld [vmem:[%s251_s1 + $0x18] sm:$0xff]  ;;  %v21_v9 = vld [vmem:[%s251_s1 + $0x20] sm:$0xff]  ;;  %v22_v10 = vld [vmem:[%s251_s1 + $0x28] sm:$0xff] }
   0x3   :  { %v35_v7 = vpack.c.bf16 %v20_v5, %v19_v4  ;;  %v36_v11 = vpack.c.bf16 %v22_v10, %v21_v9  ;;  %v23_v13 = vld [vmem:[%s251_s1 + $0x30] sm:$0xff]  ;;  %v24_v14 = vld [vmem:[%s251_s1 + $0x38] sm:$0xff]  ;;  %v25_v17 = vld [vmem:[%s251_s1 + $0x40] sm:$0xff] }
   0x4   :  { %v54_v6 = vsel %vm49_vm0, %v34_v3, 0  ;;  %v37_v15 = vpack.c.bf16 %v24_v14, %v23_v13  ;;  %v26_v18 = vld [vmem:[%s251_s1 + $0x48] sm:$0xff]  ;;  %v27_v21 = vld [vmem:[%s251_s1 + $0x50] sm:$0xff]  ;;  %v28_v22 = vld [vmem:[%s251_s1 + $0x58] sm:$0xff] }
   0x5   :  { %136 = vmatpush3.bf16.xpose.msra.mxu0 %v54_v6  ;;  %v57_v8 = vsel %vm49_vm0, %v35_v7, 0  ;;  %v60_v12 = vsel %vm49_vm0, %v36_v11, 0  ;;  %v38_v19 = vpack.c.bf16 %v26_v18, %v25_v17  ;;  %v39_v23 = vpack.c.bf16 %v28_v22, %v27_v21  ;;  %v29_v25 = vld [vmem:[%s251_s1 + $0x60] sm:$0xff]  ;;  %v30_v26 = vld [vmem:[%s251_s1 + $0x68] sm:$0xff]  ;;  %v31_v29 = vld [vmem:[%s251_s1 + $0x70] sm:$0xff] }
   0x6   :  { %137 = vmatprep.subr.bf16.mxu0 %v157_v0  ;;  %v63_v16 = vsel %vm49_vm0, %v37_v15, 0  ;;  %v40_v27 = vpack.c.bf16 %v30_v26, %v29_v25  ;;  %v32_v30 = vld [vmem:[%s251_s1 + $0x78] sm:$0xff]  ;;  %v15_v33 = vld [vmem:[%s252_s0] sm:$0xff]  ;;  %v16_v34 = vld [vmem:[%s252_s0 + $0x8] sm:$0xff] }
   0x7   :  { %v66_v20 = vsel %vm49_vm0, %v38_v19, 0  ;;  %v69_v24 = vsel %vm49_vm0, %v39_v23, 0  ;;  %v41_v31 = vpack.c.bf16 %v32_v30, %v31_v29  ;;  %v33_v35 = vpack.c.bf16 %v16_v34, %v15_v33  ;;  %v124_v36 = vld [vmem:[%s253_s2] ss:$0 sm:$0xff] }
   0x8   :  { %v72_v28 = vsel %vm49_vm0, %v40_v27, 0 }
   0x9   :  { %v75_v32 = vsel %vm49_vm0, %v41_v31, 0 }
   0xd   :  { %138 = vmatpush3.bf16.xpose.msra.mxu0 %v57_v8 }
   0xe   :  { %139 = vmatprep.subr.bf16.mxu0 %v157_v0 }
  0x15   :  { %140 = vmatpush3.bf16.xpose.msra.mxu0 %v60_v12 }
  0x16   :  { %141 = vmatprep.subr.bf16.mxu0 %v157_v0 }
  0x1d   :  { %142 = vmatpush3.bf16.xpose.msra.mxu0 %v63_v16 }
  0x1e   :  { %143 = vmatprep.subr.bf16.mxu0 %v157_v0 }
  0x25   :  { %144 = vmatpush3.bf16.xpose.msra.mxu0 %v66_v20 }
  0x26   :  { %145 = vmatprep.subr.bf16.mxu0 %v157_v0 }
  0x2d   :  { %146 = vmatpush3.bf16.xpose.msra.mxu0 %v69_v24 }
  0x2e   :  { %147 = vmatprep.subr.bf16.mxu0 %v157_v0 }
  0x35   :  { %148 = vmatpush3.bf16.xpose.msra.mxu0 %v72_v28 }
  0x36   :  { %149 = vmatprep.subr.bf16.mxu0 %v157_v0 }
  0x3d   :  { %150 = vmatpush3.bf16.xpose.msra.mxu0 %v75_v32 }
  0x44   :  { %152 = vmatmul.mubr.msk.bf16.vlgmr.msra.gmra.mrb[0].mxu0 %vm49_vm0, %v33_v35 }
 0x117   :  { %v111_v37 = vpop.f32.mrb[0].mxu0 }
 0x118   :  { %v112_v38 = vadd.f32 %v124_v36, %v111_v37  ;;  %v153_v39 = vpop.f32.mrb[1].mxu0 }
 0x119   :  { %v114_v40 = vpop.f32.mrb[2].mxu0 }
 0x11a   :  { %118 = vst [vmem:[%s254_s3] sm:$0xff] %v112_v38  ;;  %v115_v41 = vadd.f32 %v124_v36, %v114_v40  ;;  %v154_v42 = vpop.f32.mrb[3].mxu0 }
 0x11c   :  { %119 = vst [vmem:[%s254_s3 + $0x8] sm:$0xff] %v115_v41 }

// kernel: enhanced_lstm_forward.13
= control target key start
LH: loop header
LB: loop body
LE: loop exit
PB: predicated region body
PF: predicated region fallthrough
CT: control target
= control target key end

     0   :  { %v137_v0 = vmov 0.0   ;;  %vm42_vm0 = vcmask 261120   ;;  %vm138_vm1 = vmmov 0   ;;  %vm104_vm2 = vcmask 779264   ;;  %s211_s1 = inlined_call_operand.vmem [shape: f32[96,32], index: 1, kind: input, shape index: {}]   ;;  %s212_s0 = inlined_call_operand.vmem [shape: f32[2,32], index: 0, kind: input, shape index: {}]   ;;  %s213_s2 = inlined_call_operand.vmem [shape: f32[1,96], index: 2, kind: input, shape index: {}]   ;;  %s214_s3 = inlined_call_operand.vmem [shape: f32[2,96], index: 3, kind: output, shape index: {}]  }
   0x1   :  { %119 = vmatprep.subr.bf16.mxu0 %v137_v0  ;;  %v16_v1 = vld [vmem:[%s211_s1] sm:$0xff]  ;;  %v17_v2 = vld [vmem:[%s211_s1 + $0x8] sm:$0xff]  ;;  %131 = vmatprep.mubr.msk.bf16.mxu0 %vm138_vm1, %v137_v0  ;;  %v18_v4 = vld [vmem:[%s211_s1 + $0x10] sm:$0xff] }
   0x2   :  { %v29_v3 = vpack.c.bf16 %v17_v2, %v16_v1  ;;  %v19_v5 = vld [vmem:[%s211_s1 + $0x18] sm:$0xff]  ;;  %v20_v9 = vld [vmem:[%s211_s1 + $0x20] sm:$0xff]  ;;  %v21_v10 = vld [vmem:[%s211_s1 + $0x28] sm:$0xff] }
   0x3   :  { %v30_v7 = vpack.c.bf16 %v19_v5, %v18_v4  ;;  %v31_v11 = vpack.c.bf16 %v21_v10, %v20_v9  ;;  %v22_v13 = vld [vmem:[%s211_s1 + $0x30] sm:$0xff]  ;;  %v23_v14 = vld [vmem:[%s211_s1 + $0x38] sm:$0xff]  ;;  %v24_v17 = vld [vmem:[%s211_s1 + $0x40] sm:$0xff] }
   0x4   :  { %v47_v6 = vsel %vm42_vm0, %v29_v3, 0  ;;  %v32_v15 = vpack.c.bf16 %v23_v14, %v22_v13  ;;  %v25_v18 = vld [vmem:[%s211_s1 + $0x48] sm:$0xff]  ;;  %v26_v21 = vld [vmem:[%s211_s1 + $0x50] sm:$0xff]  ;;  %v27_v22 = vld [vmem:[%s211_s1 + $0x58] sm:$0xff] }
   0x5   :  { %120 = vmatpush3.bf16.xpose.msra.mxu0 %v47_v6  ;;  %v50_v8 = vsel %vm42_vm0, %v30_v7, 0  ;;  %v53_v12 = vsel %vm42_vm0, %v31_v11, 0  ;;  %v33_v19 = vpack.c.bf16 %v25_v18, %v24_v17  ;;  %v34_v23 = vpack.c.bf16 %v27_v22, %v26_v21  ;;  %v15_v25 = vld [vmem:[%s212_s0] sm:$0x3] }
   0x6   :  { %121 = vmatprep.subr.bf16.mxu0 %v137_v0  ;;  %v56_v16 = vsel %vm42_vm0, %v32_v15, 0  ;;  %v28_v26 = vpack.c.bf16 %v15_v25, %v15_v25  ;;  %v110_v27 = vld [vmem:[%s213_s2] ss:$0 sm:$0xff] }
   0x7   :  { %v59_v20 = vsel %vm42_vm0, %v33_v19, 0  ;;  %v62_v24 = vsel %vm42_vm0, %v34_v23, 0 }
   0xd   :  { %122 = vmatpush3.bf16.xpose.msra.mxu0 %v50_v8 }
   0xe   :  { %123 = vmatprep.subr.bf16.mxu0 %v137_v0 }
  0x15   :  { %124 = vmatpush3.bf16.xpose.msra.mxu0 %v53_v12 }
  0x16   :  { %125 = vmatprep.subr.bf16.mxu0 %v137_v0 }
  0x1d   :  { %126 = vmatpush3.bf16.xpose.msra.mxu0 %v56_v16 }
  0x1e   :  { %127 = vmatprep.subr.bf16.mxu0 %v137_v0 }
  0x25   :  { %128 = vmatpush3.bf16.xpose.msra.mxu0 %v59_v20 }
  0x26   :  { %129 = vmatprep.subr.bf16.mxu0 %v137_v0 }
  0x2d   :  { %130 = vmatpush3.bf16.xpose.msra.mxu0 %v62_v24 }
  0x34   :  { %132 = vmatmul.mubr.msk.bf16.vlgmr.msra.gmra.mrb[0].mxu0 %vm42_vm0, %v28_v26 }
 0x107   :  { %v98_v28 = vpop.f32.mrb[0].mxu0 }
 0x108   :  { %v99_v29 = vadd.f32 %v110_v27, %v98_v28  ;;  %v133_v30 = vpop.f32.mrb[1].mxu0 }
 0x109   :  { %v101_v31 = vpop.f32.mrb[2].mxu0 }
 0x10a   :  { %105 = vst.msk [vmem:[%s214_s3] sm:$0x3] %vm104_vm2, %v99_v29  ;;  %v134_v32 = vpop.f32.mrb[3].mxu0 }

// kernel: enhanced_lstm_forward.10
= control target key start
LH: loop header
LB: loop body
LE: loop exit
PB: predicated region body
PF: predicated region fallthrough
CT: control target
= control target key end

     0   :  { %vm25_vm0 = vcmask 254976   ;;  %v1308_v0 = vmov 0.0   ;;  %vm55_vm1 = vcmask 261120   ;;  %vm1309_vm2 = vmmov 0   ;;  %s1310_s26 = smov 64   ;;  %s1311_s27 = smov 32   ;;  %s1852_s2 = inlined_call_operand.vmem [shape: f32[128,32], index: 2, kind: input, shape index: {}]   ;;  %s1853_s0 = inlined_call_operand.vmem [shape: f32[8,2,128], index: 0, kind: input, shape index: {}]   ;;  %s1854_s5 = inlined_call_operand.vmem [shape: f32[8,2,32], index: 5, kind: output, shape index: {}]   ;;  %s1855_s1 = inlined_call_operand.vmem [shape: f32[8,2,32], index: 1, kind: input, shape index: {}]   ;;  %s1856_s3 = inlined_call_operand.vmem [shape: f32[1,1,32], index: 3, kind: input, shape index: {}]   ;;  %s1857_s4 = inlined_call_operand.vmem [shape: f32[1,1,32], index: 4, kind: input, shape index: {}]  }
   0x1   :  { %1063 = vmatprep.subr.bf16.mxu0 %v1308_v0  ;;  %v28_v1 = vld [vmem:[%s1852_s2] sm:$0xff]  ;;  %v29_v2 = vld [vmem:[%s1852_s2 + $0x8] sm:$0xff]  ;;  %1079 = vmatprep.mubr.msk.bf16.mxu0 %vm1309_vm2, %v1308_v0  ;;  %26 = vst.msk [vmem:[#allocation2] sm:$0x3] %vm25_vm0, %v1308_v0  ;;  %27 = vst.msk [vmem:[#allocation3] sm:$0x3] %vm25_vm0, %v1308_v0 }
   0x2   :  { %v44_v3 = vpack.c.bf16 %v29_v2, %v28_v1  ;;  %1083 = vmatprep.subr.bf16.mxu1 %v1308_v0  ;;  %1099 = vmatprep.mubr.msk.bf16.mxu1 %vm1309_vm2, %v1308_v0  ;;  %v30_v4 = vld [vmem:[%s1852_s2 + $0x10] sm:$0xff]  ;;  %v31_v5 = vld [vmem:[%s1852_s2 + $0x18] sm:$0xff]  ;;  %v32_v9 = vld [vmem:[%s1852_s2 + $0x20] sm:$0xff]  ;;  %s1312_s28 = smov 96  }
   0x3   :  { %v45_v7 = vpack.c.bf16 %v31_v5, %v30_v4  ;;  %v33_v10 = vld [vmem:[%s1852_s2 + $0x28] sm:$0xff]  ;;  %v34_v13 = vld [vmem:[%s1852_s2 + $0x30] sm:$0xff]  ;;  %v35_v14 = vld [vmem:[%s1852_s2 + $0x38] sm:$0xff] }
   0x4   :  { %v1366_v6 = vsel %vm55_vm1, %v44_v3, 0  ;;  %v46_v11 = vpack.c.bf16 %v33_v10, %v32_v9  ;;  %v47_v15 = vpack.c.bf16 %v35_v14, %v34_v13  ;;  %v36_v17 = vld [vmem:[%s1852_s2 + $0x40] sm:$0xff]  ;;  %v37_v18 = vld [vmem:[%s1852_s2 + $0x48] sm:$0xff]  ;;  %v38_v21 = vld [vmem:[%s1852_s2 + $0x50] sm:$0xff] }
   0x5   :  { %1064 = vmatpush3.bf16.xpose.msra.mxu0 %v1366_v6  ;;  %1084 = vmatpush3.bf16.xpose.msra.mxu1 %v1366_v6  ;;  %v1373_v8 = vsel %vm55_vm1, %v45_v7, 0  ;;  %v48_v19 = vpack.c.bf16 %v37_v18, %v36_v17  ;;  %v39_v22 = vld [vmem:[%s1852_s2 + $0x58] sm:$0xff]  ;;  %v40_v25 = vld [vmem:[%s1852_s2 + $0x60] sm:$0xff]  ;;  %v41_v26 = vld [vmem:[%s1852_s2 + $0x68] sm:$0xff] }
   0x6   :  { %1065 = vmatprep.subr.bf16.mxu0 %v1308_v0  ;;  %1085 = vmatprep.subr.bf16.mxu1 %v1308_v0  ;;  %v1386_v12 = vsel %vm55_vm1, %v46_v11, 0  ;;  %v1399_v16 = vsel %vm55_vm1, %v47_v15, 0  ;;  %v49_v23 = vpack.c.bf16 %v39_v22, %v38_v21  ;;  %v50_v27 = vpack.c.bf16 %v41_v26, %v40_v25  ;;  %v42_v29 = vld [vmem:[%s1852_s2 + $0x70] sm:$0xff]  ;;  %v43_v30 = vld [vmem:[%s1852_s2 + $0x78] sm:$0xff]  ;;  %v52_v35 = vld [vmem:[%s1853_s0] sm:$0x3] }
   0x7   :  { %v1412_v20 = vsel %vm55_vm1, %v48_v19, 0  ;;  %v51_v31 = vpack.c.bf16 %v43_v30, %v42_v29  ;;  %v961_v61 = vld [vmem:[%s1853_s0 + $0x2] sm:$0x3]  ;;  %v965_v30 = vld [vmem:[%s1853_s0 + $0x4] sm:$0x3] }
   0x8   :  { %v1425_v24 = vsel %vm55_vm1, %v49_v23, 0  ;;  %v1438_v28 = vsel %vm55_vm1, %v50_v27, 0  ;;  %v53_v33 = vld [vmem:[#allocation2] sm:$0x3]  ;;  %v131_v42 = vld [vmem:[#allocation3] sm:$0x3] }
   0x9   :  { %v1451_v32 = vsel %vm55_vm1, %v51_v31, 0  ;;  %v54_v34 = vpack.c.bf16 %v53_v33, %v53_v33 }
   0xd   :  { %1066 = vmatpush3.bf16.xpose.msra.mxu0 %v1373_v8  ;;  %1086 = vmatpush3.bf16.xpose.msra.mxu1 %v1373_v8 }
   0xe   :  { %1067 = vmatprep.subr.bf16.mxu0 %v1308_v0  ;;  %1087 = vmatprep.subr.bf16.mxu1 %v1308_v0 }
  0x15   :  { %1068 = vmatpush3.bf16.xpose.msra.mxu0 %v1386_v12  ;;  %1088 = vmatpush3.bf16.xpose.msra.mxu1 %v1386_v12 }
  0x16   :  { %1069 = vmatprep.subr.bf16.mxu0 %v1308_v0  ;;  %1089 = vmatprep.subr.bf16.mxu1 %v1308_v0 }
  0x1d   :  { %1070 = vmatpush3.bf16.xpose.msra.mxu0 %v1399_v16  ;;  %1090 = vmatpush3.bf16.xpose.msra.mxu1 %v1399_v16 }
  0x1e   :  { %1071 = vmatprep.subr.bf16.mxu0 %v1308_v0  ;;  %1091 = vmatprep.subr.bf16.mxu1 %v1308_v0 }
  0x25   :  { %1072 = vmatpush3.bf16.xpose.msra.mxu0 %v1412_v20  ;;  %1092 = vmatpush3.bf16.xpose.msra.mxu1 %v1412_v20 }
  0x26   :  { %1073 = vmatprep.subr.bf16.mxu0 %v1308_v0  ;;  %1093 = vmatprep.subr.bf16.mxu1 %v1308_v0 }
  0x2d   :  { %1074 = vmatpush3.bf16.xpose.msra.mxu0 %v1425_v24  ;;  %1094 = vmatpush3.bf16.xpose.msra.mxu1 %v1425_v24 }
  0x2e   :  { %1075 = vmatprep.subr.bf16.mxu0 %v1308_v0  ;;  %1095 = vmatprep.subr.bf16.mxu1 %v1308_v0 }
  0x35   :  { %1076 = vmatpush3.bf16.xpose.msra.mxu0 %v1438_v28  ;;  %1096 = vmatpush3.bf16.xpose.msra.mxu1 %v1438_v28 }
  0x36   :  { %1077 = vmatprep.subr.bf16.mxu0 %v1308_v0  ;;  %1097 = vmatprep.subr.bf16.mxu1 %v1308_v0 }
  0x3d   :  { %1078 = vmatpush3.bf16.xpose.msra.mxu0 %v1451_v32  ;;  %1098 = vmatpush3.bf16.xpose.msra.mxu1 %v1451_v32 }
  0x3e   :  { %1103 = vmatprep.subr.bf16.mxu0 %v1308_v0  ;;  %1123 = vmatprep.subr.bf16.mxu1 %v1308_v0 }
  0x44   :  { %1080 = vmatmul.mubr.msk.bf16.vlgmr.msra.gmra.mrb[0].mxu0 %vm55_vm1, %v54_v34 }
  0x45   :  { %1104 = vmatpush3.bf16.xpose.msra.mxu0 %v1366_v6  ;;  %1119 = vmatprep.mubr.msk.bf16.mxu0 %vm1309_vm2, %v1308_v0 }
  0x46   :  { %1105 = vmatprep.subr.bf16.mxu0 %v1308_v0 }
  0x4d   :  { %1106 = vmatpush3.bf16.xpose.msra.mxu0 %v1373_v8 }
  0x4e   :  { %1107 = vmatprep.subr.bf16.mxu0 %v1308_v0 }
  0x55   :  { %1108 = vmatpush3.bf16.xpose.msra.mxu0 %v1386_v12 }
  0x56   :  { %1109 = vmatprep.subr.bf16.mxu0 %v1308_v0 }
  0x5d   :  { %1110 = vmatpush3.bf16.xpose.msra.mxu0 %v1399_v16 }
  0x5e   :  { %1111 = vmatprep.subr.bf16.mxu0 %v1308_v0 }
  0x65   :  { %1112 = vmatpush3.bf16.xpose.msra.mxu0 %v1412_v20 }
  0x66   :  { %1113 = vmatprep.subr.bf16.mxu0 %v1308_v0 }
  0x6d   :  { %1114 = vmatpush3.bf16.xpose.msra.mxu0 %v1425_v24 }
  0x6e   :  { %1115 = vmatprep.subr.bf16.mxu0 %v1308_v0 }
  0x75   :  { %1116 = vmatpush3.bf16.xpose.msra.mxu0 %v1438_v28 }
  0x76   :  { %1117 = vmatprep.subr.bf16.mxu0 %v1308_v0 }
  0x7d   :  { %1118 = vmatpush3.bf16.xpose.msra.mxu0 %v1451_v32 }
  0x7e   :  { %1143 = vmatprep.subr.bf16.mxu0 %v1308_v0 }
 0x117   :  { %v117_v36 = vpop.f32.mrb[0].mxu0 }
 0x118   :  { %v123_v37 = vadd.f32 %v117_v36, %v52_v35  ;;  %v1081_v38 = vpop.f32.mrb[1].mxu0 }
 0x119   :  { %v120_v39 = vpop.f32.mrb[2].mxu0 }
 0x11a   :  { %1228 = vtanh.f32 %v123_v37  ;;  %v1082_v40 = vpop.f32.mrb[3].mxu0  ;;  %v960_v43 = vmul.f32 -1.442695, %v123_v37 }
 0x11c   :  { %1230 = vpow2.f32 %v960_v43 }
 0x124   :  { %v1229_v41 = vpop.eup %1228 }
 0x125   :  { %138 = vrot.lane.b32.xlu0 %v1229_v41, %s1310_s26 }
 0x126   :  { %v1231_v44 = vpop.eup %1230 }
 0x127   :  { %v127_v45 = vadd.f32 1.0, %v1231_v44 }
 0x129   :  { %133 = vrot.lane.b32.xlu0 %v131_v42, %s1311_s27  ;;  %1232 = vrcp.f32 %v127_v45 }
 0x133   :  { %v1233_v46 = vpop.eup %1232 }
 0x197   :  { %v139_v47 = vpop.permute.xlu0 %138 }
 0x198   :  { %v141_v48 = vmul.f32 %v1233_v46, %v139_v47 }
 0x19a   :  { %143 = vrot.lane.b32.xlu1 %v141_v48, %s1311_s27 }
 0x19b   :  { %v134_v49 = vpop.permute.xlu0 %133 }
 0x19c   :  { %v136_v50 = vmul.f32 %v1233_v46, %v134_v49 }
 0x20c   :  { %v144_v51 = vpop.permute.xlu1 %143 }
 0x20d   :  { %v146_v52 = vadd.f32 %v144_v51, %v136_v50 }
 0x20f   :  { %1234 = vtanh.f32 %v146_v52 }
 0x219   :  { %v1235_v53 = vpop.eup %1234 }
 0x21a   :  { %149 = vrot.lane.b32.xlu1 %v1235_v53, %s1310_s26 }
 0x21e   :  { %154 = vrot.lane.b32.xlu1 %v146_v52, %s1312_s28 }
 0x28c   :  { %v150_v54 = vpop.permute.xlu1 %149 }
 0x28d   :  { %v152_v55 = vmul.f32 %v1233_v46, %v150_v54 }
 0x28f   :  { %160 = vrot.lane.b32.xlu0 %v152_v55, %s1311_s27 }
 0x290   :  { %v155_v56 = vpop.permute.xlu1 %154 }
 0x291   :  { %158 = vst.msk [vmem:[#allocation3] sm:$0x3] %vm25_vm0, %v155_v56  ;;  %v969_v56 = vld [vmem:[%s1853_s0 + $0x6] sm:$0x3] }
 0x298   :  { %v220_v57 = vld [vmem:[#allocation3] sm:$0x3] }
 0x299   :  { %222 = vrot.lane.b32.xlu1 %v220_v57, %s1311_s27 }
 0x301   :  { %v161_v58 = vpop.permute.xlu0 %160 }
 0x302   :  { %163 = vst.msk [vmem:[#allocation2] sm:$0x3] %vm25_vm0, %v161_v58  ;;  %164 = vst.msk [vmem:[%s1854_s5] sm:$0x3] %vm25_vm0, %v161_v58 }
 0x309   :  { %v167_v59 = vld [vmem:[#allocation2] sm:$0x3] }
 0x30a   :  { %v168_v60 = vpack.c.bf16 %v167_v59, %v167_v59 }
 0x30b   :  { %v223_v14 = vpop.permute.xlu1 %222 }
 0x30c   :  { %1100 = vmatmul.mubr.msk.bf16.vlgmr.msra.gmra.mrb[0].mxu1 %vm55_vm1, %v168_v60 }
 0x30d   :  { %1124 = vmatpush3.bf16.xpose.msra.mxu1 %v1366_v6  ;;  %1139 = vmatprep.mubr.msk.bf16.mxu1 %vm1309_vm2, %v1308_v0 }
 0x30e   :  { %1125 = vmatprep.subr.bf16.mxu1 %v1308_v0 }
 0x315   :  { %1126 = vmatpush3.bf16.xpose.msra.mxu1 %v1373_v8 }
 0x316   :  { %1127 = vmatprep.subr.bf16.mxu1 %v1308_v0 }
 0x31d   :  { %1128 = vmatpush3.bf16.xpose.msra.mxu1 %v1386_v12 }
 0x31e   :  { %1129 = vmatprep.subr.bf16.mxu1 %v1308_v0 }
 0x325   :  { %1130 = vmatpush3.bf16.xpose.msra.mxu1 %v1399_v16 }
 0x326   :  { %1131 = vmatprep.subr.bf16.mxu1 %v1308_v0 }
 0x32d   :  { %1132 = vmatpush3.bf16.xpose.msra.mxu1 %v1412_v20 }
 0x32e   :  { %1133 = vmatprep.subr.bf16.mxu1 %v1308_v0 }
 0x335   :  { %1134 = vmatpush3.bf16.xpose.msra.mxu1 %v1425_v24 }
 0x336   :  { %1135 = vmatprep.subr.bf16.mxu1 %v1308_v0 }
 0x33d   :  { %1136 = vmatpush3.bf16.xpose.msra.mxu1 %v1438_v28 }
 0x33e   :  { %1137 = vmatprep.subr.bf16.mxu1 %v1308_v0 }
 0x345   :  { %1138 = vmatpush3.bf16.xpose.msra.mxu1 %v1451_v32 }
 0x346   :  { %1163 = vmatprep.subr.bf16.mxu1 %v1308_v0 }
 0x3df   :  { %v206_v62 = vpop.f32.mrb[0].mxu1 }
 0x3e0   :  { %v212_v63 = vadd.f32 %v961_v61, %v206_v62  ;;  %v1101_v1 = vpop.f32.mrb[1].mxu1 }
 0x3e1   :  { %v209_v2 = vpop.f32.mrb[2].mxu1 }
 0x3e2   :  { %1236 = vtanh.f32 %v212_v63  ;;  %v1102_v3 = vpop.f32.mrb[3].mxu1  ;;  %v963_v5 = vmul.f32 -1.442695, %v212_v63 }
 0x3e4   :  { %1238 = vpow2.f32 %v963_v5 }
 0x3ec   :  { %v1237_v4 = vpop.eup %1236 }
 0x3ed   :  { %227 = vrot.lane.b32.xlu0 %v1237_v4, %s1310_s26 }
 0x3ee   :  { %v1239_v7 = vpop.eup %1238 }
 0x3ef   :  { %v216_v9 = vadd.f32 1.0, %v1239_v7 }
 0x3f1   :  { %1240 = vrcp.f32 %v216_v9 }
 0x3fb   :  { %v1241_v10 = vpop.eup %1240 }
 0x3fc   :  { %v225_v15 = vmul.f32 %v1241_v10, %v223_v14 }
 0x45f   :  { %v228_v11 = vpop.permute.xlu0 %227 }
 0x460   :  { %v230_v13 = vmul.f32 %v1241_v10, %v228_v11 }
 0x462   :  { %232 = vrot.lane.b32.xlu0 %v230_v13, %s1311_s27 }
 0x4d4   :  { %v233_v17 = vpop.permute.xlu0 %232 }
 0x4d5   :  { %v235_v18 = vadd.f32 %v233_v17, %v225_v15 }
 0x4d7   :  { %1242 = vtanh.f32 %v235_v18 }
 0x4e1   :  { %v1243_v19 = vpop.eup %1242 }
 0x4e2   :  { %238 = vrot.lane.b32.xlu1 %v1243_v19, %s1310_s26 }
 0x4e6   :  { %243 = vrot.lane.b32.xlu1 %v235_v18, %s1312_s28 }
 0x554   :  { %v239_v21 = vpop.permute.xlu1 %238 }
 0x555   :  { %v241_v22 = vmul.f32 %v1241_v10, %v239_v21 }
 0x557   :  { %248 = vrot.lane.b32.xlu0 %v241_v22, %s1311_s27 }
 0x558   :  { %v244_v23 = vpop.permute.xlu1 %243 }
 0x559   :  { %246 = vst.msk [vmem:[#allocation3] sm:$0x3] %vm25_vm0, %v244_v23  ;;  %v973_v23 = vld [vmem:[%s1853_s0 + $0x8] sm:$0x3] }
 0x560   :  { %v309_v25 = vld [vmem:[#allocation3] sm:$0x3] }
 0x561   :  { %311 = vrot.lane.b32.xlu1 %v309_v25, %s1311_s27 }
 0x5c9   :  { %v249_v26 = vpop.permute.xlu0 %248 }
 0x5ca   :  { %251 = vst.msk [vmem:[#allocation2] sm:$0x3] %vm25_vm0, %v249_v26  ;;  %964 = vst.msk [vmem:[%s1854_s5 + $0x2] sm:$0x3] %vm25_vm0, %v249_v26 }
 0x5d1   :  { %v256_v27 = vld [vmem:[#allocation2] sm:$0x3] }
 0x5d2   :  { %v257_v29 = vpack.c.bf16 %v256_v27, %v256_v27 }
 0x5d3   :  { %v312_v44 = vpop.permute.xlu1 %311 }
 0x5d4   :  { %1120 = vmatmul.mubr.msk.bf16.vlgmr.msra.gmra.mrb[4].mxu0 %vm55_vm1, %v257_v29 }
 0x5d5   :  { %1144 = vmatpush3.bf16.xpose.msra.mxu0 %v1366_v6  ;;  %1159 = vmatprep.mubr.msk.bf16.mxu0 %vm1309_vm2, %v1308_v0 }
 0x5d6   :  { %1145 = vmatprep.subr.bf16.mxu0 %v1308_v0 }
 0x5dd   :  { %1146 = vmatpush3.bf16.xpose.msra.mxu0 %v1373_v8 }
 0x5de   :  { %1147 = vmatprep.subr.bf16.mxu0 %v1308_v0 }
 0x5e5   :  { %1148 = vmatpush3.bf16.xpose.msra.mxu0 %v1386_v12 }
 0x5e6   :  { %1149 = vmatprep.subr.bf16.mxu0 %v1308_v0 }
 0x5ed   :  { %1150 = vmatpush3.bf16.xpose.msra.mxu0 %v1399_v16 }
 0x5ee   :  { %1151 = vmatprep.subr.bf16.mxu0 %v1308_v0 }
 0x5f5   :  { %1152 = vmatpush3.bf16.xpose.msra.mxu0 %v1412_v20 }
 0x5f6   :  { %1153 = vmatprep.subr.bf16.mxu0 %v1308_v0 }
 0x5fd   :  { %1154 = vmatpush3.bf16.xpose.msra.mxu0 %v1425_v24 }
 0x5fe   :  { %1155 = vmatprep.subr.bf16.mxu0 %v1308_v0 }
 0x605   :  { %1156 = vmatpush3.bf16.xpose.msra.mxu0 %v1438_v28 }
 0x606   :  { %1157 = vmatprep.subr.bf16.mxu0 %v1308_v0 }
 0x60d   :  { %1158 = vmatpush3.bf16.xpose.msra.mxu0 %v1451_v32 }
 0x60e   :  { %1183 = vmatprep.subr.bf16.mxu0 %v1308_v0 }
 0x6a7   :  { %v295_v31 = vpop.f32.mrb[4].mxu0 }
 0x6a8   :  { %v301_v33 = vadd.f32 %v965_v30, %v295_v31  ;;  %v1121_v34 = vpop.f32.mrb[5].mxu0 }
 0x6a9   :  { %v298_v35 = vpop.f32.mrb[6].mxu0 }
 0x6aa   :  { %1244 = vtanh.f32 %v301_v33  ;;  %v1122_v36 = vpop.f32.mrb[7].mxu0  ;;  %v967_v38 = vmul.f32 -1.442695, %v301_v33 }
 0x6ac   :  { %1246 = vpow2.f32 %v967_v38 }
 0x6b4   :  { %v1245_v37 = vpop.eup %1244 }
 0x6b5   :  { %316 = vrot.lane.b32.xlu0 %v1245_v37, %s1310_s26 }
 0x6b6   :  { %v1247_v39 = vpop.eup %1246 }
 0x6b7   :  { %v305_v40 = vadd.f32 1.0, %v1247_v39 }
 0x6b9   :  { %1248 = vrcp.f32 %v305_v40 }
 0x6c3   :  { %v1249_v41 = vpop.eup %1248 }
 0x6c4   :  { %v314_v45 = vmul.f32 %v1249_v41, %v312_v44 }
 0x727   :  { %v317_v42 = vpop.permute.xlu0 %316 }
 0x728   :  { %v319_v43 = vmul.f32 %v1249_v41, %v317_v42 }
 0x72a   :  { %321 = vrot.lane.b32.xlu0 %v319_v43, %s1311_s27 }
 0x79c   :  { %v322_v46 = vpop.permute.xlu0 %321 }
 0x79d   :  { %v324_v47 = vadd.f32 %v322_v46, %v314_v45 }
 0x79f   :  { %1250 = vtanh.f32 %v324_v47 }
 0x7a9   :  { %v1251_v48 = vpop.eup %1250 }
 0x7aa   :  { %327 = vrot.lane.b32.xlu1 %v1251_v48, %s1310_s26 }
 0x7ae   :  { %332 = vrot.lane.b32.xlu1 %v324_v47, %s1312_s28 }
 0x81c   :  { %v328_v49 = vpop.permute.xlu1 %327 }
 0x81d   :  { %v330_v50 = vmul.f32 %v1249_v41, %v328_v49 }
 0x81f   :  { %337 = vrot.lane.b32.xlu0 %v330_v50, %s1311_s27 }
 0x820   :  { %v333_v51 = vpop.permute.xlu1 %332 }
 0x821   :  { %335 = vst.msk [vmem:[#allocation3] sm:$0x3] %vm25_vm0, %v333_v51 }
 0x828   :  { %v398_v52 = vld [vmem:[#allocation3] sm:$0x3] }
 0x829   :  { %400 = vrot.lane.b32.xlu1 %v398_v52, %s1311_s27 }
 0x891   :  { %v338_v53 = vpop.permute.xlu0 %337 }
 0x892   :  { %340 = vst.msk [vmem:[#allocation2] sm:$0x3] %vm25_vm0, %v338_v53  ;;  %968 = vst.msk [vmem:[%s1854_s5 + $0x4] sm:$0x3] %vm25_vm0, %v338_v53 }
 0x899   :  { %v345_v54 = vld [vmem:[#allocation2] sm:$0x3] }
 0x89a   :  { %v346_v55 = vpack.c.bf16 %v345_v54, %v345_v54 }
 0x89b   :  { %v401_v7 = vpop.permute.xlu1 %400 }
 0x89c   :  { %1140 = vmatmul.mubr.msk.bf16.vlgmr.msra.gmra.mrb[4].mxu1 %vm55_vm1, %v346_v55 }
 0x89d   :  { %1164 = vmatpush3.bf16.xpose.msra.mxu1 %v1366_v6  ;;  %1179 = vmatprep.mubr.msk.bf16.mxu1 %vm1309_vm2, %v1308_v0 }
 0x89e   :  { %1165 = vmatprep.subr.bf16.mxu1 %v1308_v0 }
 0x8a5   :  { %1166 = vmatpush3.bf16.xpose.msra.mxu1 %v1373_v8 }
 0x8a6   :  { %1167 = vmatprep.subr.bf16.mxu1 %v1308_v0 }
 0x8ad   :  { %1168 = vmatpush3.bf16.xpose.msra.mxu1 %v1386_v12 }
 0x8ae   :  { %1169 = vmatprep.subr.bf16.mxu1 %v1308_v0 }
 0x8b5   :  { %1170 = vmatpush3.bf16.xpose.msra.mxu1 %v1399_v16 }
 0x8b6   :  { %1171 = vmatprep.subr.bf16.mxu1 %v1308_v0 }
 0x8bd   :  { %1172 = vmatpush3.bf16.xpose.msra.mxu1 %v1412_v20 }
 0x8be   :  { %1173 = vmatprep.subr.bf16.mxu1 %v1308_v0 }
 0x8c5   :  { %1174 = vmatpush3.bf16.xpose.msra.mxu1 %v1425_v24 }
 0x8c6   :  { %1175 = vmatprep.subr.bf16.mxu1 %v1308_v0 }
 0x8cd   :  { %1176 = vmatpush3.bf16.xpose.msra.mxu1 %v1438_v28 }
 0x8ce   :  { %1177 = vmatprep.subr.bf16.mxu1 %v1308_v0 }
 0x8d5   :  { %1178 = vmatpush3.bf16.xpose.msra.mxu1 %v1451_v32 }
 0x8d6   :  { %1203 = vmatprep.subr.bf16.mxu1 %v1308_v0 }
 0x96f   :  { %v384_v57 = vpop.f32.mrb[4].mxu1 }
 0x970   :  { %v390_v58 = vadd.f32 %v969_v56, %v384_v57  ;;  %v1141_v59 = vpop.f32.mrb[5].mxu1 }
 0x971   :  { %v387_v60 = vpop.f32.mrb[6].mxu1 }
 0x972   :  { %1252 = vtanh.f32 %v390_v58  ;;  %v1142_v61 = vpop.f32.mrb[7].mxu1  ;;  %v971_v63 = vmul.f32 -1.442695, %v390_v58 }
 0x974   :  { %1254 = vpow2.f32 %v971_v63 }
 0x97c   :  { %v1253_v62 = vpop.eup %1252 }
 0x97d   :  { %405 = vrot.lane.b32.xlu0 %v1253_v62, %s1310_s26 }
 0x97e   :  { %v1255_v1 = vpop.eup %1254 }
 0x97f   :  { %v394_v2 = vadd.f32 1.0, %v1255_v1 }
 0x981   :  { %1256 = vrcp.f32 %v394_v2 }
 0x98b   :  { %v1257_v3 = vpop.eup %1256 }
 0x98c   :  { %v403_v9 = vmul.f32 %v1257_v3, %v401_v7 }
 0x9ef   :  { %v406_v4 = vpop.permute.xlu0 %405 }
 0x9f0   :  { %v408_v5 = vmul.f32 %v1257_v3, %v406_v4  ;;  %v981_v4 = vld [vmem:[%s1853_s0 + $0xc] sm:$0x3] }
 0x9f2   :  { %410 = vrot.lane.b32.xlu0 %v408_v5, %s1311_s27 }
 0xa64   :  { %v411_v10 = vpop.permute.xlu0 %410 }
 0xa65   :  { %v413_v11 = vadd.f32 %v411_v10, %v403_v9 }
 0xa67   :  { %1258 = vtanh.f32 %v413_v11 }
 0xa71   :  { %v1259_v13 = vpop.eup %1258 }
 0xa72   :  { %416 = vrot.lane.b32.xlu1 %v1259_v13, %s1310_s26 }
 0xa76   :  { %421 = vrot.lane.b32.xlu1 %v413_v11, %s1312_s28 }
 0xae4   :  { %v417_v14 = vpop.permute.xlu1 %416 }
 0xae5   :  { %v419_v15 = vmul.f32 %v1257_v3, %v417_v14 }
 0xae7   :  { %426 = vrot.lane.b32.xlu0 %v419_v15, %s1311_s27 }
 0xae8   :  { %v422_v17 = vpop.permute.xlu1 %421 }
 0xae9   :  { %424 = vst.msk [vmem:[#allocation3] sm:$0x3] %vm25_vm0, %v422_v17 }
 0xaf0   :  { %v487_v18 = vld [vmem:[#allocation3] sm:$0x3] }
 0xaf1   :  { %489 = vrot.lane.b32.xlu1 %v487_v18, %s1311_s27 }
 0xb59   :  { %v427_v19 = vpop.permute.xlu0 %426 }
 0xb5a   :  { %429 = vst.msk [vmem:[#allocation2] sm:$0x3] %vm25_vm0, %v427_v19  ;;  %972 = vst.msk [vmem:[%s1854_s5 + $0x6] sm:$0x3] %vm25_vm0, %v427_v19 }
 0xb61   :  { %v434_v21 = vld [vmem:[#allocation2] sm:$0x3] }
 0xb62   :  { %v435_v22 = vpack.c.bf16 %v434_v21, %v434_v21 }
 0xb63   :  { %v490_v39 = vpop.permute.xlu1 %489 }
 0xb64   :  { %1160 = vmatmul.mubr.msk.bf16.vlgmr.msra.gmra.mrb[8].mxu0 %vm55_vm1, %v435_v22 }
 0xb65   :  { %1184 = vmatpush3.bf16.xpose.msra.mxu0 %v1366_v6  ;;  %1199 = vmatprep.mubr.msk.bf16.mxu0 %vm1309_vm2, %v1308_v0 }
 0xb66   :  { %1185 = vmatprep.subr.bf16.mxu0 %v1308_v0 }
 0xb6d   :  { %1186 = vmatpush3.bf16.xpose.msra.mxu0 %v1373_v8 }
 0xb6e   :  { %1187 = vmatprep.subr.bf16.mxu0 %v1308_v0 }
 0xb75   :  { %1188 = vmatpush3.bf16.xpose.msra.mxu0 %v1386_v12 }
 0xb76   :  { %1189 = vmatprep.subr.bf16.mxu0 %v1308_v0 }
 0xb7d   :  { %1190 = vmatpush3.bf16.xpose.msra.mxu0 %v1399_v16 }
 0xb7e   :  { %1191 = vmatprep.subr.bf16.mxu0 %v1308_v0 }
 0xb85   :  { %1192 = vmatpush3.bf16.xpose.msra.mxu0 %v1412_v20 }
 0xb86   :  { %1193 = vmatprep.subr.bf16.mxu0 %v1308_v0 }
 0xb8d   :  { %1194 = vmatpush3.bf16.xpose.msra.mxu0 %v1425_v24 }
 0xb8e   :  { %1195 = vmatprep.subr.bf16.mxu0 %v1308_v0 }
 0xb95   :  { %1196 = vmatpush3.bf16.xpose.msra.mxu0 %v1438_v28 }
 0xb96   :  { %1197 = vmatprep.subr.bf16.mxu0 %v1308_v0 }
 0xb9d   :  { %1198 = vmatpush3.bf16.xpose.msra.mxu0 %v1451_v32 }
 0xc37   :  { %v473_v25 = vpop.f32.mrb[8].mxu0 }
 0xc38   :  { %v479_v26 = vadd.f32 %v973_v23, %v473_v25  ;;  %v1161_v27 = vpop.f32.mrb[9].mxu0 }
 0xc39   :  { %v476_v29 = vpop.f32.mrb[10].mxu0 }
 0xc3a   :  { %1260 = vtanh.f32 %v479_v26  ;;  %v1162_v30 = vpop.f32.mrb[11].mxu0  ;;  %v975_v33 = vmul.f32 -1.442695, %v479_v26 }
 0xc3c   :  { %1262 = vpow2.f32 %v975_v33 }
 0xc44   :  { %v1261_v31 = vpop.eup %1260 }
 0xc45   :  { %494 = vrot.lane.b32.xlu0 %v1261_v31, %s1310_s26 }
 0xc46   :  { %v1263_v34 = vpop.eup %1262 }
 0xc47   :  { %v483_v35 = vadd.f32 1.0, %v1263_v34 }
 0xc49   :  { %1264 = vrcp.f32 %v483_v35 }
 0xc53   :  { %v1265_v36 = vpop.eup %1264 }
 0xc54   :  { %v492_v40 = vmul.f32 %v1265_v36, %v490_v39 }
 0xcb7   :  { %v495_v37 = vpop.permute.xlu0 %494 }
 0xcb8   :  { %v497_v38 = vmul.f32 %v1265_v36, %v495_v37  ;;  %v985_v37 = vld [vmem:[%s1853_s0 + $0xe] sm:$0x3] }
 0xcba   :  { %499 = vrot.lane.b32.xlu0 %v497_v38, %s1311_s27 }
 0xd2c   :  { %v500_v41 = vpop.permute.xlu0 %499 }
 0xd2d   :  { %v502_v42 = vadd.f32 %v500_v41, %v492_v40 }
 0xd2f   :  { %1266 = vtanh.f32 %v502_v42 }
 0xd39   :  { %v1267_v43 = vpop.eup %1266 }
 0xd3a   :  { %505 = vrot.lane.b32.xlu1 %v1267_v43, %s1310_s26 }
 0xd3e   :  { %510 = vrot.lane.b32.xlu1 %v502_v42, %s1312_s28 }
 0xdac   :  { %v506_v44 = vpop.permute.xlu1 %505 }
 0xdad   :  { %v508_v45 = vmul.f32 %v1265_v36, %v506_v44 }
 0xdaf   :  { %515 = vrot.lane.b32.xlu0 %v508_v45, %s1311_s27 }
 0xdb0   :  { %v511_v46 = vpop.permute.xlu1 %510 }
 0xdb1   :  { %513 = vst.msk [vmem:[#allocation3] sm:$0x3] %vm25_vm0, %v511_v46 }
 0xdb8   :  { %v576_v47 = vld [vmem:[#allocation3] sm:$0x3] }
 0xdb9   :  { %578 = vrot.lane.b32.xlu1 %v576_v47, %s1311_s27 }
 0xe21   :  { %v516_v48 = vpop.permute.xlu0 %515 }
 0xe22   :  { %518 = vst.msk [vmem:[#allocation2] sm:$0x3] %vm25_vm0, %v516_v48  ;;  %976 = vst.msk [vmem:[%s1854_s5 + $0x8] sm:$0x3] %vm25_vm0, %v516_v48 }
 0xe29   :  { %v523_v49 = vld [vmem:[#allocation2] sm:$0x3] }
 0xe2a   :  { %v524_v50 = vpack.c.bf16 %v523_v49, %v523_v49 }
 0xe2b   :  { %v579_v55 = vpop.permute.xlu1 %578 }
 0xe2c   :  { %1180 = vmatmul.mubr.msk.bf16.vlgmr.msra.gmra.mrb[8].mxu1 %vm55_vm1, %v524_v50 }
 0xe2d   :  { %1204 = vmatpush3.bf16.xpose.msra.mxu1 %v1366_v6  ;;  %1219 = vmatprep.mubr.msk.bf16.mxu1 %vm1309_vm2, %v1308_v0  ;;  %v977_v6 = vld [vmem:[%s1853_s0 + $0xa] sm:$0x3] }
 0xe2e   :  { %1205 = vmatprep.subr.bf16.mxu1 %v1308_v0 }
 0xe35   :  { %1206 = vmatpush3.bf16.xpose.msra.mxu1 %v1373_v8 }
 0xe36   :  { %1207 = vmatprep.subr.bf16.mxu1 %v1308_v0 }
 0xe3d   :  { %1208 = vmatpush3.bf16.xpose.msra.mxu1 %v1386_v12 }
 0xe3e   :  { %1209 = vmatprep.subr.bf16.mxu1 %v1308_v0 }
 0xe45   :  { %1210 = vmatpush3.bf16.xpose.msra.mxu1 %v1399_v16 }
 0xe46   :  { %1211 = vmatprep.subr.bf16.mxu1 %v1308_v0 }
 0xe4d   :  { %1212 = vmatpush3.bf16.xpose.msra.mxu1 %v1412_v20 }
 0xe4e   :  { %1213 = vmatprep.subr.bf16.mxu1 %v1308_v0 }
 0xe55   :  { %1214 = vmatpush3.bf16.xpose.msra.mxu1 %v1425_v24 }
 0xe56   :  { %1215 = vmatprep.subr.bf16.mxu1 %v1308_v0 }
 0xe5d   :  { %1216 = vmatpush3.bf16.xpose.msra.mxu1 %v1438_v28 }
 0xe5e   :  { %1217 = vmatprep.subr.bf16.mxu1 %v1308_v0 }
 0xe65   :  { %1218 = vmatpush3.bf16.xpose.msra.mxu1 %v1451_v32 }
 0xeff   :  { %v562_v8 = vpop.f32.mrb[8].mxu1 }
 0xf00   :  { %v568_v12 = vadd.f32 %v977_v6, %v562_v8  ;;  %v1181_v16 = vpop.f32.mrb[9].mxu1 }
 0xf01   :  { %v565_v20 = vpop.f32.mrb[10].mxu1 }
 0xf02   :  { %1268 = vtanh.f32 %v568_v12  ;;  %v1182_v51 = vpop.f32.mrb[11].mxu1  ;;  %v979_v24 = vmul.f32 -1.442695, %v568_v12  ;;  %v788_v20 = vld [vmem:[%s1854_s5] sm:$0x3] }
 0xf03   :  { %v796_v51 = vld [vmem:[%s1855_s1] sm:$0x3] }
 0xf04   :  { %1270 = vpow2.f32 %v979_v24  ;;  %v791_v24 = vld [vmem:[%s1854_s5 + $0x6] sm:$0x3] }
 0xf0c   :  { %v1269_v52 = vpop.eup %1268 }
 0xf0d   :  { %583 = vrot.lane.b32.xlu0 %v1269_v52, %s1310_s26  ;;  %v804_v52 = vadd.f32 %v796_v51, %v788_v20 }
 0xf0e   :  { %v1271_v28 = vpop.eup %1270 }
 0xf0f   :  { %v572_v53 = vadd.f32 1.0, %v1271_v28  ;;  %v799_v28 = vld [vmem:[%s1855_s1 + $0x6] sm:$0x3] }
 0xf11   :  { %1272 = vrcp.f32 %v572_v53  ;;  %v812_v53 = vsel %vm25_vm0, %v804_v52, 0.0 }
 0xf1b   :  { %v1273_v0 = vpop.eup %1272 }
 0xf1c   :  { %v581_v56 = vmul.f32 %v1273_v0, %v579_v55 }
 0xf7f   :  { %v584_v32 = vpop.permute.xlu0 %583 }
 0xf80   :  { %v586_v54 = vmul.f32 %v1273_v0, %v584_v32 }
 0xf82   :  { %588 = vrot.lane.b32.xlu0 %v586_v54, %s1311_s27  ;;  %v801_v54 = vld [vmem:[%s1855_s1 + $0xa] sm:$0x3] }
 0xff4   :  { %v589_v57 = vpop.permute.xlu0 %588 }
 0xff5   :  { %v591_v58 = vadd.f32 %v589_v57, %v581_v56 }
 0xff7   :  { %1274 = vtanh.f32 %v591_v58 }
0x1001   :  { %v1275_v59 = vpop.eup %1274 }
0x1002   :  { %594 = vrot.lane.b32.xlu1 %v1275_v59, %s1310_s26 }
0x1006   :  { %599 = vrot.lane.b32.xlu1 %v591_v58, %s1312_s28 }
0x1074   :  { %v595_v60 = vpop.permute.xlu1 %594 }
0x1075   :  { %v597_v61 = vmul.f32 %v1273_v0, %v595_v60  ;;  %v807_v0 = vadd.f32 %v799_v28, %v791_v24  ;;  %v789_v60 = vld [vmem:[%s1854_s5 + $0x2] sm:$0x3] }
0x1077   :  { %604 = vrot.lane.b32.xlu0 %v597_v61, %s1311_s27  ;;  %v821_v55 = vsel %vm25_vm0, %v807_v0, 0.0  ;;  %v797_v61 = vld [vmem:[%s1855_s1 + $0x2] sm:$0x3] }
0x1078   :  { %v600_v62 = vpop.permute.xlu1 %599 }
0x1079   :  { %602 = vst.msk [vmem:[#allocation3] sm:$0x3] %vm25_vm0, %v600_v62  ;;  %v805_v62 = vadd.f32 %v797_v61, %v789_v60 }
0x1080   :  { %v665_v63 = vld [vmem:[#allocation3] sm:$0x3] }
0x1081   :  { %667 = vrot.lane.b32.xlu1 %v665_v63, %s1311_s27  ;;  %v790_v63 = vld [vmem:[%s1854_s5 + $0x4] sm:$0x3] }
0x10e9   :  { %v605_v1 = vpop.permute.xlu0 %604 }
0x10ea   :  { %607 = vst.msk [vmem:[#allocation2] sm:$0x3] %vm25_vm0, %v605_v1  ;;  %980 = vst.msk [vmem:[%s1854_s5 + $0xa] sm:$0x3] %vm25_vm0, %v605_v1  ;;  %v798_v1 = vld [vmem:[%s1855_s1 + $0x4] sm:$0x3] }
0x10f1   :  { %v612_v2 = vld [vmem:[#allocation2] sm:$0x3]  ;;  %v793_v32 = vld [vmem:[%s1854_s5 + $0xa] sm:$0x3] }
0x10f2   :  { %v613_v3 = vpack.c.bf16 %v612_v2, %v612_v2  ;;  %v809_v56 = vadd.f32 %v801_v54, %v793_v32  ;;  %v815_v2 = vsel %vm25_vm0, %v805_v62, 0.0 }
0x10f3   :  { %v668_v22 = vpop.permute.xlu1 %667 }
0x10f4   :  { %1200 = vmatmul.mubr.msk.bf16.vlgmr.msra.gmra.mrb[12].mxu0 %vm55_vm1, %v613_v3  ;;  %v827_v57 = vsel %vm25_vm0, %v809_v56, 0.0  ;;  %v806_v3 = vadd.f32 %v798_v1, %v790_v63 }
0x11c7   :  { %v651_v5 = vpop.f32.mrb[12].mxu0 }
0x11c8   :  { %v657_v7 = vadd.f32 %v981_v4, %v651_v5  ;;  %v1201_v9 = vpop.f32.mrb[13].mxu0  ;;  %v792_v4 = vld [vmem:[%s1854_s5 + $0x8] sm:$0x3] }
0x11c9   :  { %v654_v10 = vpop.f32.mrb[14].mxu0  ;;  %v800_v5 = vld [vmem:[%s1855_s1 + $0x8] sm:$0x3] }
0x11ca   :  { %1276 = vtanh.f32 %v657_v7  ;;  %v1202_v11 = vpop.f32.mrb[15].mxu0  ;;  %v983_v14 = vmul.f32 -1.442695, %v657_v7  ;;  %v818_v7 = vsel %vm25_vm0, %v806_v3, 0.0  ;;  %v808_v9 = vadd.f32 %v800_v5, %v792_v4 }
0x11cb   :  { %v802_v11 = vld [vmem:[%s1855_s1 + $0xc] sm:$0x3] }
0x11cc   :  { %1278 = vpow2.f32 %v983_v14 }
0x11d4   :  { %v1277_v13 = vpop.eup %1276 }
0x11d5   :  { %672 = vrot.lane.b32.xlu0 %v1277_v13, %s1310_s26  ;;  %v824_v13 = vsel %vm25_vm0, %v808_v9, 0.0 }
0x11d6   :  { %v1279_v15 = vpop.eup %1278 }
0x11d7   :  { %v661_v17 = vadd.f32 1.0, %v1279_v15 }
0x11d9   :  { %1280 = vrcp.f32 %v661_v17 }
0x11e3   :  { %v1281_v18 = vpop.eup %1280 }
0x11e4   :  { %v670_v23 = vmul.f32 %v1281_v18, %v668_v22 }
0x1247   :  { %v673_v19 = vpop.permute.xlu0 %672 }
0x1248   :  { %v675_v21 = vmul.f32 %v1281_v18, %v673_v19 }
0x124a   :  { %677 = vrot.lane.b32.xlu0 %v675_v21, %s1311_s27 }
0x12bc   :  { %v678_v25 = vpop.permute.xlu0 %677 }
0x12bd   :  { %v680_v26 = vadd.f32 %v678_v25, %v670_v23  ;;  %v803_v25 = vld [vmem:[%s1855_s1 + $0xe] sm:$0x3] }
0x12bf   :  { %1282 = vtanh.f32 %v680_v26 }
0x12c9   :  { %v1283_v27 = vpop.eup %1282 }
0x12ca   :  { %683 = vrot.lane.b32.xlu1 %v1283_v27, %s1310_s26 }
0x12ce   :  { %688 = vrot.lane.b32.xlu1 %v680_v26, %s1312_s28 }
0x133c   :  { %v684_v29 = vpop.permute.xlu1 %683 }
0x133d   :  { %v686_v30 = vmul.f32 %v1281_v18, %v684_v29 }
0x133f   :  { %693 = vrot.lane.b32.xlu0 %v686_v30, %s1311_s27 }
0x1340   :  { %v689_v31 = vpop.permute.xlu1 %688 }
0x1341   :  { %691 = vst.msk [vmem:[#allocation3] sm:$0x3] %vm25_vm0, %v689_v31 }
0x1348   :  { %v754_v33 = vld [vmem:[#allocation3] sm:$0x3] }
0x1349   :  { %756 = vrot.lane.b32.xlu1 %v754_v33, %s1311_s27 }
0x13b1   :  { %v694_v34 = vpop.permute.xlu0 %693 }
0x13b2   :  { %696 = vst.msk [vmem:[#allocation2] sm:$0x3] %vm25_vm0, %v694_v34  ;;  %984 = vst.msk [vmem:[%s1854_s5 + $0xc] sm:$0x3] %vm25_vm0, %v694_v34 }
0x13b9   :  { %v701_v35 = vld [vmem:[#allocation2] sm:$0x3]  ;;  %v794_v10 = vld [vmem:[%s1854_s5 + $0xc] sm:$0x3] }
0x13ba   :  { %v702_v36 = vpack.c.bf16 %v701_v35, %v701_v35  ;;  %v810_v14 = vadd.f32 %v802_v11, %v794_v10 }
0x13bb   :  { %v757_v50 = vpop.permute.xlu1 %756 }
0x13bc   :  { %1220 = vmatmul.mubr.msk.bf16.vlgmr.msra.gmra.mrb[12].mxu1 %vm55_vm1, %v702_v36  ;;  %v830_v15 = vsel %vm25_vm0, %v810_v14, 0.0 }
0x148f   :  { %v740_v38 = vpop.f32.mrb[12].mxu1 }
0x1490   :  { %v746_v39 = vadd.f32 %v985_v37, %v740_v38  ;;  %v1221_v40 = vpop.f32.mrb[13].mxu1 }
0x1491   :  { %v743_v41 = vpop.f32.mrb[14].mxu1 }
0x1492   :  { %1284 = vtanh.f32 %v746_v39  ;;  %v1222_v42 = vpop.f32.mrb[15].mxu1  ;;  %v987_v44 = vmul.f32 -1.442695, %v746_v39 }
0x1494   :  { %1286 = vpow2.f32 %v987_v44 }
0x149c   :  { %v1285_v43 = vpop.eup %1284 }
0x149d   :  { %761 = vrot.lane.b32.xlu0 %v1285_v43, %s1310_s26 }
0x149e   :  { %v1287_v45 = vpop.eup %1286 }
0x149f   :  { %v750_v46 = vadd.f32 1.0, %v1287_v45 }
0x14a1   :  { %1288 = vrcp.f32 %v750_v46 }
0x14ab   :  { %v1289_v47 = vpop.eup %1288 }
0x14ac   :  { %v759_v6 = vmul.f32 %v1289_v47, %v757_v50 }
0x150f   :  { %v762_v48 = vpop.permute.xlu0 %761 }
0x1510   :  { %v764_v49 = vmul.f32 %v1289_v47, %v762_v48 }
0x1512   :  { %766 = vrot.lane.b32.xlu0 %v764_v49, %s1311_s27 }
0x1584   :  { %v767_v8 = vpop.permute.xlu0 %766 }
0x1585   :  { %v1682_v12 = vadd.f32 %v767_v8, %v759_v6 }
0x1587   :  { %1290 = vtanh.f32 %v1682_v12 }
0x1591   :  { %v1291_v16 = vpop.eup %1290 }
0x1592   :  { %772 = vrot.lane.b32.xlu1 %v1291_v16, %s1310_s26 }
0x15b6   :  { %813 = vadd.xlane.f32.xlu1 %v812_v53 }
0x15ba   :  { %822 = vadd.xlane.f32.xlu1 %v821_v55 }
0x15be   :  { %828 = vadd.xlane.f32.xlu1 %v827_v57  ;;  %v1784_v57 = vld [vmem:[%s1856_s3] ss:$0 sm:$0xff] }
0x1604   :  { %v773_v58 = vpop.permute.xlu1 %772 }
0x1605   :  { %v775_v59 = vmul.f32 %v1289_v47, %v773_v58 }
0x1607   :  { %782 = vrot.lane.b32.xlu0 %v775_v59, %s1311_s27  ;;  %v1789_v59 = vld [vmem:[%s1857_s4] ss:$0 sm:$0xff] }
0x1626   :  { %816 = vadd.xlane.f32.xlu0 %v815_v2 }
0x162a   :  { %819 = vadd.xlane.f32.xlu0 %v818_v7 }
0x162e   :  { %825 = vadd.xlane.f32.xlu0 %v824_v13 }
0x1632   :  { %831 = vadd.xlane.f32.xlu0 %v830_v15 }
0x1643   :  { %v814_v17 = vpop.xlane.xlu1 %813 }
0x1644   :  { %v837_v18 = vmul.f32 0.03125, %v814_v17 }
0x1646   :  { %v845_v19 = vsub.f32 %v804_v52, %v837_v18 }
0x1647   :  { %v823_v30 = vpop.xlane.xlu1 %822 }
0x1648   :  { %v853_v21 = vmul.f32 %v845_v19, %v845_v19  ;;  %v840_v31 = vmul.f32 0.03125, %v823_v30 }
0x164a   :  { %v861_v22 = vsel %vm25_vm0, %v853_v21, 0.0  ;;  %v1749_v36 = vsub.f32 %v807_v0, %v840_v31 }
0x164b   :  { %862 = vadd.xlane.f32.xlu0 %v861_v22  ;;  %v829_v33 = vpop.xlane.xlu1 %828 }
0x164c   :  { %v842_v37 = vmul.f32 0.03125, %v829_v33  ;;  %v856_v45 = vmul.f32 %v1749_v36, %v1749_v36 }
0x164e   :  { %v1755_v42 = vsub.f32 %v809_v56, %v842_v37  ;;  %v870_v6 = vsel %vm25_vm0, %v856_v45, 0.0 }
0x1650   :  { %v858_v8 = vmul.f32 %v1755_v42, %v1755_v42 }
0x1652   :  { %v876_v28 = vsel %vm25_vm0, %v858_v8, 0.0 }
0x1679   :  { %v783_v23 = vpop.permute.xlu0 %782 }
0x167a   :  { %785 = vst.msk [vmem:[#allocation2] sm:$0x3] %vm25_vm0, %v783_v23  ;;  %988 = vst.msk [vmem:[%s1854_s5 + $0xe] sm:$0x3] %vm25_vm0, %v783_v23 }
0x1681   :  { %v795_v26 = vld [vmem:[%s1854_s5 + $0xe] sm:$0x3] }
0x1682   :  { %v811_v27 = vadd.f32 %v803_v25, %v795_v26 }
0x1684   :  { %v833_v29 = vsel %vm25_vm0, %v811_v27, 0.0 }
0x1685   :  { %834 = vadd.xlane.f32.xlu1 %v833_v29 }
0x16b3   :  { %v817_v34 = vpop.xlane.xlu0 %816 }
0x16b4   :  { %v838_v35 = vmul.f32 0.03125, %v817_v34 }
0x16b6   :  { %v1751_v38 = vsub.f32 %v805_v62, %v838_v35 }
0x16b7   :  { %v820_v39 = vpop.xlane.xlu0 %819 }
0x16b8   :  { %v839_v40 = vmul.f32 0.03125, %v820_v39  ;;  %v854_v41 = vmul.f32 %v1751_v38, %v1751_v38 }
0x16ba   :  { %v1757_v43 = vsub.f32 %v806_v3, %v839_v40  ;;  %v864_v44 = vsel %vm25_vm0, %v854_v41, 0.0 }
0x16bb   :  { %865 = vadd.xlane.f32.xlu1 %v864_v44  ;;  %v826_v46 = vpop.xlane.xlu0 %825 }
0x16bc   :  { %v841_v47 = vmul.f32 0.03125, %v826_v46  ;;  %v855_v48 = vmul.f32 %v1757_v43, %v1757_v43 }
0x16be   :  { %v1764_v49 = vsub.f32 %v808_v9, %v841_v47  ;;  %v867_v50 = vsel %vm25_vm0, %v855_v48, 0.0 }
0x16bf   :  { %v832_v16 = vpop.xlane.xlu0 %831  ;;  %868 = vadd.xlane.f32.xlu0 %v867_v50  ;;  %871 = vadd.xlane.f32.xlu1 %v870_v6 }
0x16c0   :  { %v843_v20 = vmul.f32 0.03125, %v832_v16  ;;  %v857_v51 = vmul.f32 %v1764_v49, %v1764_v49 }
0x16c2   :  { %v1772_v52 = vsub.f32 %v810_v14, %v843_v20  ;;  %v873_v24 = vsel %vm25_vm0, %v857_v51, 0.0 }
0x16c3   :  { %874 = vadd.xlane.f32.xlu0 %v873_v24  ;;  %877 = vadd.xlane.f32.xlu1 %v876_v28 }
0x16c4   :  { %v859_v53 = vmul.f32 %v1772_v52, %v1772_v52 }
0x16c6   :  { %v879_v0 = vsel %vm25_vm0, %v859_v53, 0.0 }
0x16c7   :  { %880 = vadd.xlane.f32.xlu0 %v879_v0 }
0x16d8   :  { %v863_v32 = vpop.xlane.xlu0 %862 }
0x16d9   :  { %v885_v54 = vmul.f32 0.03125, %v863_v32 }
0x16db   :  { %v893_v55 = vadd.f32 1e-05, %v885_v54 }
0x16dd   :  { %1292 = vrsqrt.f32 %v893_v55  ;;  %777 = vrot.lane.b32.xlu0 %v1682_v12, %s1312_s28 }
0x16e7   :  { %v1293_v56 = vpop.eup %1292 }
0x16e8   :  { %v909_v58 = vmul.f32 %v1293_v56, %v845_v19 }
0x16ea   :  { %v924_v60 = vmul.f32 %v1784_v57, %v909_v58 }
0x16ec   :  { %v939_v61 = vadd.f32 %v1789_v59, %v924_v60 }
0x16ee   :  { %947 = vst.msk [vmem:[%s1854_s5] sm:$0x3] %vm25_vm0, %v939_v61 }
0x1712   :  { %v835_v12 = vpop.xlane.xlu1 %834 }
0x1713   :  { %v844_v62 = vmul.f32 0.03125, %v835_v12 }
0x1715   :  { %v1797_v63 = vsub.f32 %v811_v27, %v844_v62 }
0x1717   :  { %v860_v1 = vmul.f32 %v1797_v63, %v1797_v63 }
0x1719   :  { %v882_v2 = vsel %vm25_vm0, %v860_v1, 0.0 }
0x171a   :  { %883 = vadd.xlane.f32.xlu1 %v882_v2 }
0x1748   :  { %v866_v3 = vpop.xlane.xlu1 %865 }
0x1749   :  { %v886_v4 = vmul.f32 0.03125, %v866_v3 }
0x174b   :  { %v894_v5 = vadd.f32 1e-05, %v886_v4 }
0x174c   :  { %v869_v7 = vpop.xlane.xlu0 %868  ;;  %v872_v9 = vpop.xlane.xlu1 %871 }
0x174d   :  { %1294 = vrsqrt.f32 %v894_v5  ;;  %v887_v10 = vmul.f32 0.03125, %v869_v7  ;;  %v888_v11 = vmul.f32 0.03125, %v872_v9 }
0x174f   :  { %v895_v13 = vadd.f32 1e-05, %v887_v10  ;;  %v896_v14 = vadd.f32 1e-05, %v888_v11 }
0x1750   :  { %v875_v15 = vpop.xlane.xlu0 %874  ;;  %v878_v17 = vpop.xlane.xlu1 %877 }
0x1751   :  { %1296 = vrsqrt.f32 %v895_v13  ;;  %v889_v18 = vmul.f32 0.03125, %v875_v15  ;;  %v890_v19 = vmul.f32 0.03125, %v878_v17 }
0x1752   :  { %1298 = vrsqrt.f32 %v896_v14 }
0x1753   :  { %v897_v21 = vadd.f32 1e-05, %v889_v18  ;;  %v898_v22 = vadd.f32 1e-05, %v890_v19 }
0x1754   :  { %v881_v23 = vpop.xlane.xlu0 %880 }
0x1755   :  { %1300 = vrsqrt.f32 %v897_v21  ;;  %v891_v25 = vmul.f32 0.03125, %v881_v23 }
0x1756   :  { %1302 = vrsqrt.f32 %v898_v22 }
0x1757   :  { %v1295_v26 = vpop.eup %1294  ;;  %v899_v27 = vadd.f32 1e-05, %v891_v25 }
0x1758   :  { %v910_v29 = vmul.f32 %v1295_v26, %v1751_v38  ;;  %v778_v30 = vpop.permute.xlu0 %777 }
0x1759   :  { %1304 = vrsqrt.f32 %v899_v27  ;;  %780 = vst.msk [vmem:[#allocation3] sm:$0x3] %vm25_vm0, %v778_v30 }
0x175a   :  { %v925_v31 = vmul.f32 %v1784_v57, %v910_v29 }
0x175b   :  { %v1297_v33 = vpop.eup %1296 }
0x175c   :  { %v1299_v34 = vpop.eup %1298  ;;  %v940_v35 = vadd.f32 %v1789_v59, %v925_v31  ;;  %v911_v37 = vmul.f32 %v1297_v33, %v1757_v43 }
0x175d   :  { %v912_v39 = vmul.f32 %v1299_v34, %v1749_v36 }
0x175e   :  { %948 = vst.msk [vmem:[%s1854_s5 + $0x2] sm:$0x3] %vm25_vm0, %v940_v35  ;;  %v926_v38 = vmul.f32 %v1784_v57, %v911_v37 }
0x175f   :  { %v1301_v40 = vpop.eup %1300  ;;  %v927_v41 = vmul.f32 %v1784_v57, %v912_v39 }
0x1760   :  { %v1303_v44 = vpop.eup %1302  ;;  %v941_v45 = vadd.f32 %v1789_v59, %v926_v38  ;;  %v913_v46 = vmul.f32 %v1301_v40, %v1764_v49 }
0x1761   :  { %v942_v47 = vadd.f32 %v1789_v59, %v927_v41  ;;  %v914_v43 = vmul.f32 %v1303_v44, %v1755_v42 }
0x1762   :  { %949 = vst.msk [vmem:[%s1854_s5 + $0x4] sm:$0x3] %vm25_vm0, %v941_v45  ;;  %v928_v36 = vmul.f32 %v1784_v57, %v913_v46 }
0x1763   :  { %v1305_v48 = vpop.eup %1304  ;;  %950 = vst.msk [vmem:[%s1854_s5 + $0x6] sm:$0x3] %vm25_vm0, %v942_v47  ;;  %v929_v50 = vmul.f32 %v1784_v57, %v914_v43 }
0x1764   :  { %v943_v49 = vadd.f32 %v1789_v59, %v928_v36  ;;  %v915_v6 = vmul.f32 %v1305_v48, %v1772_v52 }
0x1765   :  { %v944_v42 = vadd.f32 %v1789_v59, %v929_v50 }
0x1766   :  { %951 = vst.msk [vmem:[%s1854_s5 + $0x8] sm:$0x3] %vm25_vm0, %v943_v49  ;;  %v930_v8 = vmul.f32 %v1784_v57, %v915_v6 }
0x1767   :  { %952 = vst.msk [vmem:[%s1854_s5 + $0xa] sm:$0x3] %vm25_vm0, %v944_v42 }
0x1768   :  { %v945_v16 = vadd.f32 %v1789_v59, %v930_v8 }
0x176a   :  { %953 = vst.msk [vmem:[%s1854_s5 + $0xc] sm:$0x3] %vm25_vm0, %v945_v16 }
0x17a7   :  { %v884_v20 = vpop.xlane.xlu1 %883 }
0x17a8   :  { %v892_v51 = vmul.f32 0.03125, %v884_v20 }
0x17aa   :  { %v900_v52 = vadd.f32 1e-05, %v892_v51 }
0x17ac   :  { %1306 = vrsqrt.f32 %v900_v52 }
0x17b6   :  { %v1307_v24 = vpop.eup %1306 }
0x17b7   :  { %v916_v28 = vmul.f32 %v1307_v24, %v1797_v63 }
0x17b9   :  { %v931_v53 = vmul.f32 %v1784_v57, %v916_v28 }
0x17bb   :  { %v946_v0 = vadd.f32 %v1789_v59, %v931_v53 }
0x17bd   :  { %954 = vst.msk [vmem:[%s1854_s5 + $0xe] sm:$0x3] %vm25_vm0, %v946_v0 }

// kernel: enhanced_lstm_forward.14
= control target key start
LH: loop header
LB: loop body
LE: loop exit
PB: predicated region body
PF: predicated region fallthrough
CT: control target
= control target key end

     0   :  { %v562_v0 = vmov 0.0   ;;  %vm31_vm0 = vcmask 64512   ;;  %vm563_vm1 = vmmov 0   ;;  %vm220_vm2 = vcmask 9216   ;;  %s680_s1 = inlined_call_operand.vmem [shape: f32[4,2,8], index: 1, kind: input, shape index: {}]   ;;  %s681_s0 = inlined_call_operand.vmem [shape: f32[4,2,8], index: 0, kind: input, shape index: {}]   ;;  %s682_s2 = inlined_call_operand.vmem [shape: f32[4,2,8], index: 2, kind: input, shape index: {}]   ;;  %s683_s3 = inlined_call_operand.vmem [shape: f32[4,2,8], index: 3, kind: output, shape index: {}]  }
   0x1   :  { %496 = vmatprep.subr.bf16.mxu0 %v562_v0  ;;  %v23_v1 = vld [vmem:[%s680_s1] sm:$0x3]  ;;  %502 = vmatprep.subr.bf16.mxu1 %v562_v0  ;;  %v24_v2 = vld [vmem:[%s680_s1 + $0x2] sm:$0x3]  ;;  %v25_v5 = vld [vmem:[%s680_s1 + $0x4] sm:$0x3] }
   0x2   :  { %v27_v3 = vpack.c.bf16 %v23_v1, %v23_v1  ;;  %v28_v4 = vpack.c.bf16 %v24_v2, %v24_v2  ;;  %498 = vmatprep.mubr.msk.bf16.mxu0 %vm563_vm1, %v562_v0  ;;  %504 = vmatprep.mubr.msk.bf16.mxu1 %vm563_vm1, %v562_v0  ;;  %v26_v6 = vld [vmem:[%s680_s1 + $0x6] sm:$0x3]  ;;  %v15_v9 = vld [vmem:[%s681_s0] sm:$0x3]  ;;  %v16_v10 = vld [vmem:[%s681_s0 + $0x2] sm:$0x3]  ;;  %v29_v11 = vpack.c.bf16 %v25_v5, %v25_v5 }
   0x3   :  { %v30_v12 = vpack.c.bf16 %v26_v6, %v26_v6  ;;  %v19_v13 = vpack.c.bf16 %v15_v9, %v15_v9  ;;  %v20_v14 = vpack.c.bf16 %v16_v10, %v16_v10  ;;  %v17_v17 = vld [vmem:[%s681_s0 + $0x4] sm:$0x3]  ;;  %v18_v18 = vld [vmem:[%s681_s0 + $0x6] sm:$0x3]  ;;  %v269_v2 = vld [vmem:[%s682_s2] sm:$0x3] }
   0x4   :  { %v36_v7 = vsel %vm31_vm0, %v27_v3, 0  ;;  %v82_v8 = vsel %vm31_vm0, %v28_v4, 0  ;;  %v128_v15 = vsel %vm31_vm0, %v29_v11, 0  ;;  %v21_v19 = vpack.c.bf16 %v17_v17, %v17_v17  ;;  %v270_v5 = vld [vmem:[%s682_s2 + $0x2] sm:$0x3] }
   0x5   :  { %497 = vmatpush3.bf16.xpose.msra.mxu0 %v36_v7  ;;  %503 = vmatpush3.bf16.xpose.msra.mxu1 %v82_v8  ;;  %v174_v16 = vsel %vm31_vm0, %v30_v12, 0  ;;  %v22_v20 = vpack.c.bf16 %v18_v18, %v18_v18  ;;  %v273_v3 = vpack.c.bf16 %v269_v2, %v269_v2  ;;  %vm281_vm3 = vcmask 1040384   ;;  %v271_v8 = vld [vmem:[%s682_s2 + $0x4] sm:$0x3]  ;;  %v272_v11 = vld [vmem:[%s682_s2 + $0x6] sm:$0x3] }
   0x6   :  { %508 = vmatprep.subr.bf16.mxu0 %v562_v0  ;;  %514 = vmatprep.subr.bf16.mxu1 %v562_v0  ;;  %v274_v6 = vpack.c.bf16 %v270_v5, %v270_v5  ;;  %v275_v9 = vpack.c.bf16 %v271_v8, %v271_v8  ;;  %v276_v12 = vpack.c.bf16 %v272_v11, %v272_v11  ;;  %vm277_vm4 = vcmask 15360  }
   0x7   :  { %v283_v4 = vsel %vm281_vm3, %v273_v3, 0  ;;  %vm463_vm5 = vcmask 58368  }
   0x8   :  { %v329_v7 = vsel %vm281_vm3, %v274_v6, 0  ;;  %v375_v10 = vsel %vm281_vm3, %v275_v9, 0 }
   0xc   :  { %499 = vmatmul.mubr.msk.bf16.vlgmr.msra.gmra.mrb[0].mxu0 %vm31_vm0, %v19_v13  ;;  %505 = vmatmul.mubr.msk.bf16.vlgmr.msra.gmra.mrb[0].mxu1 %vm31_vm0, %v20_v14  ;;  %v421_v13 = vsel %vm281_vm3, %v276_v12, 0 }
   0xd   :  { %509 = vmatpush3.bf16.xpose.msra.mxu0 %v128_v15  ;;  %515 = vmatpush3.bf16.xpose.msra.mxu1 %v174_v16 }
   0xe   :  { %510 = vmatprep.mubr.msk.bf16.mxu0 %vm563_vm1, %v562_v0  ;;  %516 = vmatprep.mubr.msk.bf16.mxu1 %vm563_vm1, %v562_v0 }
   0xf   :  { %520 = vmatprep.subr.bf16.mxu0 %v562_v0  ;;  %526 = vmatprep.subr.bf16.mxu1 %v562_v0 }
  0x14   :  { %511 = vmatmul.mubr.msk.bf16.vlgmr.msra.gmra.mrb[4].mxu0 %vm31_vm0, %v21_v19  ;;  %517 = vmatmul.mubr.msk.bf16.vlgmr.msra.gmra.mrb[4].mxu1 %vm31_vm0, %v22_v20 }
  0x15   :  { %522 = vmatprep.mubr.msk.bf16.mxu0 %vm563_vm1, %v562_v0  ;;  %528 = vmatprep.mubr.msk.bf16.mxu1 %vm563_vm1, %v562_v0 }
  0x16   :  { %521 = vmatpush3.bf16.msra.mxu0 %v283_v4  ;;  %527 = vmatpush3.bf16.msra.mxu1 %v329_v7 }
  0x17   :  { %532 = vmatprep.subr.bf16.mxu0 %v562_v0  ;;  %538 = vmatprep.subr.bf16.mxu1 %v562_v0 }
  0xdf   :  { %v72_v21 = vpop.f32.mrb[0].mxu0  ;;  %v118_v22 = vpop.f32.mrb[0].mxu1 }
  0xe0   :  { %v216_v23 = vmul.f32 0.35355338, %v72_v21  ;;  %v500_v24 = vpop.f32.mrb[1].mxu0  ;;  %v217_v25 = vmul.f32 0.35355338, %v118_v22  ;;  %v506_v26 = vpop.f32.mrb[1].mxu1 }
  0xe1   :  { %v75_v27 = vpop.f32.mrb[2].mxu0  ;;  %v121_v28 = vpop.f32.mrb[2].mxu1 }
  0xe2   :  { %v501_v29 = vpop.f32.mrb[3].mxu0  ;;  %v221_v30 = vsel %vm220_vm2, %v216_v23, -inf  ;;  %v507_v31 = vpop.f32.mrb[3].mxu1  ;;  %v224_v32 = vsel %vm220_vm2, %v217_v25, -inf }
  0xe3   :  { %222 = vmax.xlane.f32.xlu0 %v221_v30 }
  0xe7   :  { %225 = vmax.xlane.f32.xlu0 %v224_v32  ;;  %v164_v33 = vpop.f32.mrb[4].mxu0  ;;  %v210_v34 = vpop.f32.mrb[4].mxu1 }
  0xe8   :  { %v218_v35 = vmul.f32 0.35355338, %v164_v33  ;;  %v512_v36 = vpop.f32.mrb[5].mxu0  ;;  %v219_v37 = vmul.f32 0.35355338, %v210_v34  ;;  %v518_v38 = vpop.f32.mrb[5].mxu1 }
  0xe9   :  { %v167_v39 = vpop.f32.mrb[6].mxu0  ;;  %v213_v40 = vpop.f32.mrb[6].mxu1 }
  0xea   :  { %v513_v41 = vpop.f32.mrb[7].mxu0  ;;  %v227_v42 = vsel %vm220_vm2, %v218_v35, -inf  ;;  %v519_v43 = vpop.f32.mrb[7].mxu1  ;;  %v230_v44 = vsel %vm220_vm2, %v219_v37, -inf }
  0xeb   :  { %228 = vmax.xlane.f32.xlu1 %v227_v42 }
  0xef   :  { %231 = vmax.xlane.f32.xlu1 %v230_v44 }
 0x170   :  { %v223_v45 = vpop.xlane.xlu0 %222 }
 0x171   :  { %v233_v46 = vsub.f32 %v216_v23, %v223_v45 }
 0x173   :  { %v237_v47 = vmul.f32 1.442695, %v233_v46 }
 0x174   :  { %v226_v48 = vpop.xlane.xlu0 %225 }
 0x175   :  { %546 = vpow2.f32 %v237_v47  ;;  %v234_v49 = vsub.f32 %v217_v25, %v226_v48 }
 0x177   :  { %v239_v50 = vmul.f32 1.442695, %v234_v49 }
 0x178   :  { %v229_v51 = vpop.xlane.xlu1 %228 }
 0x179   :  { %548 = vpow2.f32 %v239_v50  ;;  %v235_v52 = vsub.f32 %v218_v35, %v229_v51 }
 0x17b   :  { %v241_v53 = vmul.f32 1.442695, %v235_v52 }
 0x17c   :  { %v232_v54 = vpop.xlane.xlu1 %231 }
 0x17d   :  { %550 = vpow2.f32 %v241_v53  ;;  %v236_v55 = vsub.f32 %v219_v37, %v232_v54 }
 0x17f   :  { %v547_v56 = vpop.eup %546  ;;  %v243_v57 = vmul.f32 1.442695, %v236_v55 }
 0x180   :  { %v245_v58 = vsel %vm220_vm2, %v547_v56, 0.0 }
 0x181   :  { %552 = vpow2.f32 %v243_v57  ;;  %246 = vadd.xlane.f32.xlu0 %v245_v58 }
 0x183   :  { %v549_v59 = vpop.eup %548 }
 0x184   :  { %v248_v60 = vsel %vm220_vm2, %v549_v59, 0.0 }
 0x185   :  { %249 = vadd.xlane.f32.xlu1 %v248_v60 }
 0x187   :  { %v551_v61 = vpop.eup %550 }
 0x188   :  { %v251_v62 = vsel %vm220_vm2, %v551_v61, 0.0 }
 0x189   :  { %252 = vadd.xlane.f32.xlu0 %v251_v62 }
 0x18b   :  { %v553_v63 = vpop.eup %552 }
 0x18c   :  { %v254_v1 = vsel %vm220_vm2, %v553_v63, 0.0 }
 0x18d   :  { %255 = vadd.xlane.f32.xlu1 %v254_v1 }
 0x20e   :  { %v247_v14 = vpop.xlane.xlu0 %246 }
 0x20f   :  { %554 = vrcp.f32 %v247_v14 }
 0x212   :  { %v250_v15 = vpop.xlane.xlu1 %249 }
 0x213   :  { %556 = vrcp.f32 %v250_v15 }
 0x216   :  { %v253_v16 = vpop.xlane.xlu0 %252 }
 0x217   :  { %558 = vrcp.f32 %v253_v16 }
 0x219   :  { %v555_v17 = vpop.eup %554 }
 0x21a   :  { %v261_v18 = vmul.f32 %v555_v17, %v547_v56  ;;  %v256_v19 = vpop.xlane.xlu1 %255 }
 0x21b   :  { %560 = vrcp.f32 %v256_v19 }
 0x21c   :  { %v265_v20 = vpack.c.bf16 %v261_v18, %v261_v18 }
 0x21d   :  { %v557_v21 = vpop.eup %556 }
 0x21e   :  { %v262_v22 = vmul.f32 %v557_v21, %v549_v59  ;;  %523 = vmatmul.mubr.msk.bf16.vlgmr.msra.gmra.mrb[8].mxu0 %vm277_vm4, %v265_v20 }
 0x21f   :  { %533 = vmatpush3.bf16.msra.mxu0 %v375_v10  ;;  %534 = vmatprep.mubr.msk.bf16.mxu0 %vm563_vm1, %v562_v0 }
 0x220   :  { %v266_v23 = vpack.c.bf16 %v262_v22, %v262_v22 }
 0x221   :  { %v559_v24 = vpop.eup %558 }
 0x222   :  { %v263_v25 = vmul.f32 %v559_v24, %v551_v61  ;;  %529 = vmatmul.mubr.msk.bf16.vlgmr.msra.gmra.mrb[8].mxu1 %vm277_vm4, %v266_v23 }
 0x223   :  { %539 = vmatpush3.bf16.msra.mxu1 %v421_v13  ;;  %540 = vmatprep.mubr.msk.bf16.mxu1 %vm563_vm1, %v562_v0 }
 0x224   :  { %v267_v26 = vpack.c.bf16 %v263_v25, %v263_v25 }
 0x225   :  { %v561_v27 = vpop.eup %560 }
 0x226   :  { %v264_v28 = vmul.f32 %v561_v27, %v553_v63  ;;  %535 = vmatmul.mubr.msk.bf16.vlgmr.msra.gmra.mrb[12].mxu0 %vm277_vm4, %v267_v26 }
 0x228   :  { %v268_v29 = vpack.c.bf16 %v264_v28, %v264_v28 }
 0x22a   :  { %541 = vmatmul.mubr.msk.bf16.vlgmr.msra.gmra.mrb[12].mxu1 %vm277_vm4, %v268_v29 }
 0x2f1   :  { %v319_v30 = vpop.f32.mrb[8].mxu0 }
 0x2f2   :  { %464 = vst.msk [vmem:[%s683_s3] sm:$0x3] %vm463_vm5, %v319_v30  ;;  %v524_v31 = vpop.f32.mrb[9].mxu0 }
 0x2f3   :  { %v322_v32 = vpop.f32.mrb[10].mxu0 }
 0x2f4   :  { %v525_v33 = vpop.f32.mrb[11].mxu0 }
 0x2f5   :  { %v365_v34 = vpop.f32.mrb[8].mxu1 }
 0x2f6   :  { %465 = vst.msk [vmem:[%s683_s3 + $0x2] sm:$0x3] %vm463_vm5, %v365_v34  ;;  %v530_v0 = vpop.f32.mrb[9].mxu1 }
 0x2f7   :  { %v368_v35 = vpop.f32.mrb[10].mxu1 }
 0x2f8   :  { %v531_v36 = vpop.f32.mrb[11].mxu1 }
 0x2f9   :  { %v411_v37 = vpop.f32.mrb[12].mxu0 }
 0x2fa   :  { %466 = vst.msk [vmem:[%s683_s3 + $0x4] sm:$0x3] %vm463_vm5, %v411_v37  ;;  %v536_v38 = vpop.f32.mrb[13].mxu0 }
 0x2fb   :  { %v414_v39 = vpop.f32.mrb[14].mxu0 }
 0x2fc   :  { %v537_v40 = vpop.f32.mrb[15].mxu0 }
 0x2fd   :  { %v457_v41 = vpop.f32.mrb[12].mxu1 }
 0x2fe   :  { %467 = vst.msk [vmem:[%s683_s3 + $0x6] sm:$0x3] %vm463_vm5, %v457_v41  ;;  %v542_v42 = vpop.f32.mrb[13].mxu1 }
 0x2ff   :  { %v460_v43 = vpop.f32.mrb[14].mxu1 }
 0x300   :  { %v543_v44 = vpop.f32.mrb[15].mxu1 }

// kernel: enhanced_lstm_forward.15
= control target key start
LH: loop header
LB: loop body
LE: loop exit
PB: predicated region body
PF: predicated region fallthrough
CT: control target
= control target key end

     0   :  { %vm46_vm0 = vcmask 261120   ;;  %v289_v2 = vmov 0.0   ;;  %vm290_vm1 = vmmov 0   ;;  %s395_s0 = inlined_call_operand.vmem [shape: f32[2,32], index: 0, kind: input, shape index: {}]   ;;  %s396_s1 = inlined_call_operand.vmem [shape: f32[2,32], index: 1, kind: input, shape index: {}]   ;;  %s397_s2 = inlined_call_operand.vmem [shape: f32[32,32], index: 2, kind: input, shape index: {}]   ;;  %s398_s3 = inlined_call_operand.vmem [shape: f32[1,32], index: 3, kind: input, shape index: {}]   ;;  %s399_s4 = inlined_call_operand.vmem [shape: f32[16,32], index: 4, kind: input, shape index: {}]   ;;  %s400_s5 = inlined_call_operand.vmem [shape: f32[1,16], index: 5, kind: input, shape index: {}]   ;;  %s401_s6 = inlined_call_operand.vmem [shape: f32[4,16], index: 6, kind: input, shape index: {}]   ;;  %s402_s7 = inlined_call_operand.vmem [shape: f32[1,4], index: 7, kind: input, shape index: {}]   ;;  %s403_s8 = inlined_call_operand.hbm [shape: f32[2,4], index: 8, kind: output, shape index: {}]  }
   0x1   :  { %v32_v0 = vld [vmem:[%s397_s2] sm:$0xff]  ;;  %v33_v1 = vld [vmem:[%s397_s2 + $0x8] sm:$0xff]  ;;  %242 = vmatprep.subr.bf16.mxu0 %v289_v2  ;;  %246 = vmatprep.mubr.msk.bf16.mxu0 %vm290_vm1, %v289_v2  ;;  %v34_v4 = vld [vmem:[%s397_s2 + $0x10] sm:$0xff] }
   0x2   :  { %v37_v3 = vpack.c.bf16 %v33_v1, %v32_v0  ;;  %v35_v5 = vld [vmem:[%s397_s2 + $0x18] sm:$0xff]  ;;  %250 = vmatprep.subr.bf16.mxu1 %v289_v2  ;;  %252 = vmatprep.mubr.msk.bf16.mxu1 %vm290_vm1, %v289_v2 }
   0x3   :  { %13 = vsyncpa [#allocation3], 0  ;;  %v38_v7 = vpack.c.bf16 %v35_v5, %v34_v4  ;;  %v31_v9 = vld [vmem:[%s395_s0] sm:$0x3]  ;;  %v99_v12 = vld [vmem:[%s399_s4 + $0x8] sm:$0xff]  ;;  %vm166_vm2 = vcmask 130048  }
   0x4   :  { %v51_v6 = vsel %vm46_vm0, %v37_v3, 0  ;;  %v36_v10 = vpack.c.bf16 %v31_v9, %v31_v9  ;;  %v98_v11 = vld [vmem:[%s399_s4] sm:$0xff]  ;;  %s291_s23 = smov [#allocation2]   ;;  %vm213_vm3 = vcmask 25600  }
   0x5   :  { %243 = vmatpush3.bf16.xpose.msra.mxu0 %v51_v6  ;;  %v54_v8 = vsel %vm46_vm0, %v38_v7, 0  ;;  %v101_v13 = vpack.c.bf16 %v99_v12, %v98_v11  ;;  %v229_v15 = vld [vmem:[%s398_s3] ss:$0 sm:$0xff]  ;;  %s221_s24 = sshll.u32 %s291_s23, 4  ;;  %s222_s24 = int_to_ptr.vmem [resolvable:$true] %s221_s24 }
   0x6   :  { %244 = vmatprep.subr.bf16.mxu0 %v289_v2  ;;  %v156_v16 = vld [vmem:[%s401_s6] sm:$0xf]  ;;  %p270_p1 = scmp.lt.s32.totalorder %s222_s24, %s222_s24 }
   0x7   :  { %v113_v14 = vsel %vm46_vm0, %v101_v13, 0  ;;  %v96_v18 = vld [vmem:[%s396_s1] sm:$0x3]  ;;  %v158_v21 = vpack.c.bf16 %v156_v16, %v156_v16 }
   0x8   :  { %251 = vmatpush3.bf16.xpose.msra.mxu1 %v113_v14  ;;  %v231_v27 = vld [vmem:[%s400_s5] ss:$0 sm:$0xff]  ;;  %s265_s5 = scalar_lea.vmem %s222_s24, 32 }
   0x9   :  { %256 = vmatprep.subr.bf16.mxu1 %v289_v2  ;;  %v171_v26 = vsel %vm166_vm2, %v158_v21, 0  ;;  %v233_v35 = vld [vmem:[%s402_s7] ss:$0 sm:$0xff]  ;;  %p266_p0 = scmp.ne.s32.totalorder %s222_s24, %s265_s5  ;;  %p271_p2 = scmp.lt.s32.totalorder %s265_s5, %s265_s5 }
   0xb   :  { %p272_p3 = por %p271_p2, %p270_p1 }
   0xd   :  { %245 = vmatpush3.bf16.xpose.msra.mxu0 %v54_v8  ;;  %p273_p4 = pnand %p272_p3, %p266_p0 }
  0x14   :  { %247 = vmatmul.mubr.msk.bf16.vlgmr.msra.gmra.mrb[0].mxu0 %vm46_vm0, %v36_v10 }
  0xe7   :  { %v90_v17 = vpop.f32.mrb[0].mxu0 }
  0xe8   :  { %v91_v19 = vadd.f32 %v229_v15, %v90_v17  ;;  %v248_v20 = vpop.f32.mrb[1].mxu0 }
  0xe9   :  { %v93_v22 = vpop.f32.mrb[2].mxu0 }
  0xea   :  { %v97_v23 = vadd.f32 %v96_v18, %v91_v19  ;;  %v249_v24 = vpop.f32.mrb[3].mxu0 }
  0xec   :  { %v100_v25 = vpack.c.bf16 %v97_v23, %v97_v23 }
  0xee   :  { %253 = vmatmul.mubr.msk.bf16.vlgmr.msra.gmra.mrb[0].mxu1 %vm46_vm0, %v100_v25 }
  0xef   :  { %257 = vmatpush3.bf16.xpose.msra.mxu1 %v171_v26  ;;  %258 = vmatprep.mubr.msk.bf16.mxu1 %vm290_vm1, %v289_v2 }
 0x1c1   :  { %v149_v28 = vpop.f32.mrb[0].mxu1 }
 0x1c2   :  { %v150_v29 = vadd.f32 %v231_v27, %v149_v28  ;;  %v254_v30 = vpop.f32.mrb[1].mxu1 }
 0x1c3   :  { %v152_v31 = vpop.f32.mrb[2].mxu1 }
 0x1c4   :  { %v155_v32 = vmax.f32 %v150_v29, 0.0  ;;  %v255_v33 = vpop.f32.mrb[3].mxu1 }
 0x1c6   :  { %v157_v34 = vpack.c.bf16 %v155_v32, %v155_v32 }
 0x1c8   :  { %259 = vmatmul.mubr.msk.bf16.vlgmr.msra.gmra.mrb[4].mxu1 %vm166_vm2, %v157_v34 }
 0x29b   :  { %v207_v36 = vpop.f32.mrb[4].mxu1 }
 0x29c   :  { %v208_v37 = vadd.f32 %v233_v35, %v207_v36  ;;  %v260_v38 = vpop.f32.mrb[5].mxu1 }
 0x29d   :  { %v210_v39 = vpop.f32.mrb[6].mxu1 }
 0x29e   :  { %v261_v40 = vpop.f32.mrb[7].mxu1  ;;  %214 = vst.msk [vmem:[#allocation2] sm:$0x3] %vm213_vm3, %v208_v37 }
 0x29f   :  { %276 = shalt.err (!%p273_p4)
}
 0x2a0   :  { %s277_s7 = scalar_lea.hbm %s403_s8, 32 }
 0x2a1   :  { %p278_p5 = scmp.ne.s32.totalorder %s403_s8, %s277_s7  ;;  %p281_p6 = scmp.lt.u32.totalorder %s277_s7, %s403_s8 }
 0x2a3   :  { %p283_p7 = pnand %p281_p6, %p278_p5 }
 0x2a5   :  { %286 = shalt.err (!%p283_p7)
}
 0x2a6   :  { %224 = dma.vmem_to_hbm [thread:$0]  %s222_s24, 32, %s403_s8, [#allocation3]  }
 0x2a7   :  { %287 = dma.done.wait [#allocation3], 32  }
 0x2a8   :  { %288 = vsyncadd [#allocation3], 4294967264 }
 0x2a9   :  { %228 = vsyncpa [#allocation3], 1 }

</bundles_post_ra>
